<compile_context>
chip_gen: v7x
topology: tpu7x:2x2x1
jax: 0.10.0
libtpu: 0.0.40
codegen_flags: <defaults>
</compile_context>

<pallas_src>
import jax
import jax.numpy as jnp
from jax.experimental import pallas as pl
from jax.experimental.pallas import tpu as pltpu


def _cdm_tile_kernel(idx_ref, nw_ref, table_ref, rexp_ref, w1s_ref, b1_ref,
                     w2_ref, b2_ref, w3_ref, b3_ref, out_ref):
    tb = idx_ref.shape[0]
    num_students = table_ref.shape[0]

    # --- in-kernel student gather on the MXU: one-hot [TB,S] @ table_flat [S,NKP*D]
    onehot = (idx_ref[...] ==
              jax.lax.broadcasted_iota(jnp.int32, (tb, num_students), 1)
              ).astype(jnp.float32)                                     # [TB, S]
    emb_flat = jnp.dot(onehot, table_ref[...],
                       preferred_element_type=jnp.float32)              # [TB, NKP*D]

    # --- weighted knowledge sum + Linear(D->H), all on the MXU:
    # lane-expand norm_w with the constant 0/1 matrix R (R[n, n*D+d] = 1),
    # elementwise multiply at full lane occupancy, contract with the NKP-stacked
    # first linear layer (W1_stacked[n*D+d, h] = w1[d, h]).
    nw_exp = jnp.dot(nw_ref[...], rexp_ref[...],
                     preferred_element_type=jnp.float32)                # [TB, NKP*D]
    scaled = emb_flat * nw_exp                                          # [TB, NKP*D]
    h1 = jnp.maximum(
        jnp.dot(scaled, w1s_ref[...], preferred_element_type=jnp.float32)
        + b1_ref[...], 0.0)                                             # [TB, H]
    h2 = jnp.maximum(
        jnp.dot(h1, w2_ref[...], preferred_element_type=jnp.float32)
        + b2_ref[...], 0.0)                                             # [TB, H2]

    # Final Linear(H2 -> 1) computed as w3 @ h2^T so the result is a natively
    # lane-dense [1, TB] row (unmasked store).
    logits = jax.lax.dot_general(
        w3_ref[...], h2,
        dimension_numbers=(((1,), (1,)), ((), ())),
        preferred_element_type=jnp.float32) + b3_ref[...]               # [1, TB]
    out_ref[...] = jax.nn.sigmoid(logits)[None]                         # [1, 1, TB]


def _round_up(x: int, m: int) -> int:
    return (x + m - 1) // m * m


def neural_cdm_forward(embedding_table, student_indices, kp_idx, kp_weight, valid,
                       params, block_b=1024):
    """Forward pass.

    embedding_table : [num_students, NKP, D] f32
    student_indices : [B] int32
    kp_idx          : [B, K] int32   (knowledge-point index per slot)
    kp_weight       : [B, K] f32     (raw weight per slot)
    valid           : [B, K] f32     (1.0 for filled slots, 0.0 otherwise)
    params          : (w1[D,H], b1[1,H], w2[H,H2], b2[1,H2], w3[1,H2], b3[1,1])
    """
    w1, b1, w2, b2, w3, b3 = params
    B = student_indices.shape[0]
    S, NKP, D = embedding_table.shape
    H, H2 = w1.shape[1], w2.shape[1]

    # ---- host-side index glue (mirrors the Python dict loop in the PyTorch forward)
    # Scatter-add raw slot weights onto their knowledge-point index (duplicates add,
    # unfilled slots contribute 0), so the kernel never needs the [B, K, D] gather.
    dense_w = jnp.zeros((B, NKP), jnp.float32).at[
        jnp.arange(B)[:, None], kp_idx].add(kp_weight * valid)          # [B, NKP]
    # Normalisation denominator: unfilled slots count as weight 1.0 (PyTorch init).
    denom = jnp.where(valid > 0.0, kp_weight, 1.0).sum(axis=1, keepdims=True)
    norm_w = dense_w / (denom + 1e-8)                                   # [B, NKP]
    idx = student_indices.astype(jnp.int32).reshape(B, 1)               # [B, 1]

    # ---- constant folding for the kernel's MXU formulation ----
    table_flat = embedding_table.reshape(S, NKP * D)                    # [S, NKP*D]
    r_expand = jnp.repeat(jnp.eye(NKP, dtype=jnp.float32), D, axis=1)   # [NKP, NKP*D]
    w1_stacked = jnp.tile(w1, (NKP, 1))                                 # [NKP*D, H]

    # ---- batch tiling: lane-dense tiles, minimal padding, >= 2 steps for megacore
    b_ru = _round_up(B, 128)
    tb = _round_up(min(block_b, b_ru), 128)
    num_tiles = -(-B // tb)
    if num_tiles == 1 and b_ru >= 256:
        tb = _round_up(b_ru // 2, 128)          # split so both v7x cores get a tile
        num_tiles = -(-B // tb)
    b_pad = num_tiles * tb
    pad = b_pad - B
    if pad:
        idx = jnp.pad(idx, ((0, pad), (0, 0)))          # padded rows -> student 0
        norm_w = jnp.pad(norm_w, ((0, pad), (0, 0)))    # all-zero weights (finite)

    flops_per_row = 2 * (S * NKP * D + NKP * NKP * D + NKP * D * H + H * H2 + H2) \
        + NKP * D
    cost = pl.CostEstimate(
        flops=int(b_pad * flops_per_row),
        transcendentals=int(b_pad),
        bytes_accessed=int(4 * (b_pad * (1 + NKP + 1)
                                + S * NKP * D + NKP * NKP * D + NKP * D * H
                                + H + H * H2 + H2 + H2 + 1)))

    out = pl.pallas_call(
        _cdm_tile_kernel,
        out_shape=jax.ShapeDtypeStruct((num_tiles, 1, tb), jnp.float32),
        grid=(num_tiles,),
        in_specs=[
            pl.BlockSpec((tb, 1),        lambda i: (i, 0)),    # student idx tile
            pl.BlockSpec((tb, NKP),      lambda i: (i, 0)),    # normalised weights
            pl.BlockSpec((S, NKP * D),   lambda i: (0, 0)),    # resident table
            pl.BlockSpec((NKP, NKP * D), lambda i: (0, 0)),    # lane-expand matrix R
            pl.BlockSpec((NKP * D, H),   lambda i: (0, 0)),    # W1_stacked
            pl.BlockSpec((1, H),         lambda i: (0, 0)),    # b1
            pl.BlockSpec((H, H2),        lambda i: (0, 0)),    # w2
            pl.BlockSpec((1, H2),        lambda i: (0, 0)),    # b2
            pl.BlockSpec((1, H2),        lambda i: (0, 0)),    # w3 (stored as row)
            pl.BlockSpec((1, 1),         lambda i: (0, 0)),    # b3
        ],
        out_specs=pl.BlockSpec((1, 1, tb), lambda i: (i, 0, 0)),
        compiler_params=pltpu.CompilerParams(
            dimension_semantics=("parallel",),
            vmem_limit_bytes=32 * 1024 * 1024),
        cost_estimate=cost,
    )(idx, norm_w, table_flat, r_expand, w1_stacked, b1, w2, b2, w3, b3)

    return out.reshape(-1)[:B]   # squeeze(-1) equivalent, drop padded rows


def xavier_uniform(key, fan_in, fan_out):
    bound = (6.0 / (fan_in + fan_out)) ** 0.5
    return jax.random.uniform(key, (fan_in, fan_out), jnp.float32, -bound, bound)


if __name__ == "__main__":
    # ---- model hyperparameters (consistent with the module defaults) ----
    num_students = 8
    num_knowledge_points = 12   # NKP
    knowledge_dim = 32          # D
    hidden_dim = 64             # H
    max_knowledge_points = 10   # K slots per assignment
    batch_size = 300            # multiple tiles + a partial last tile at block_b=128

    key = jax.random.PRNGKey(0)
    k_emb, k1, k2, k3, k_s, k_n, k_kp, k_w = jax.random.split(key, 8)

    # ---- deterministic parameter init (mirrors __init__) ----
    embedding_table = jax.random.normal(
        k_emb, (num_students, num_knowledge_points, knowledge_dim), jnp.float32)
    w1 = xavier_uniform(k1, knowledge_dim, hidden_dim)          # Linear(D -> H)
    b1 = jnp.zeros((1, hidden_dim), jnp.float32)
    w2 = xavier_uniform(k2, hidden_dim, hidden_dim // 2)        # Linear(H -> H//2)
    b2 = jnp.zeros((1, hidden_dim // 2), jnp.float32)
    w3 = xavier_uniform(k3, hidden_dim // 2, 1).T               # stored as [1, H//2]
    b3 = jnp.zeros((1, 1), jnp.float32)
    params = (w1, b1, w2, b2, w3, b3)

    # ---- deterministic synthetic forward inputs ----
    student_indices = jax.random.randint(k_s, (batch_size,), 0, num_students)
    num_kps = jax.random.randint(k_n, (batch_size,), 1, max_knowledge_points + 1)
    kp_idx = jax.random.randint(
        k_kp, (batch_size, max_knowledge_points), 0, num_knowledge_points)
    kp_weight = jax.random.uniform(
        k_w, (batch_size, max_knowledge_points), jnp.float32, 0.5, 2.0)
    valid = (jnp.arange(max_knowledge_points)[None, :]
             < num_kps[:, None]).astype(jnp.float32)             # [B, K]

    # ---- run the Pallas kernel (small tile so the demo exercises 3 grid steps) ----
    scores = neural_cdm_forward(embedding_table, student_indices, kp_idx, kp_weight,
                                valid, params, block_b=128)
    scores = jax.block_until_ready(scores)

    # ---- pure-JAX reference (mirrors the PyTorch forward exactly) ----
    student_embeddings = embedding_table[student_indices]                 # [B, NKP, D]
    gathered = jnp.take_along_axis(student_embeddings, kp_idx[:, :, None], axis=1)
    knowledge_vectors = gathered * valid[:, :, None]                      # [B, K, D]
    knowledge_weights = jnp.where(valid > 0, kp_weight, 1.0)              # [B, K]
    norm_w = knowledge_weights / (knowledge_weights.sum(axis=1, keepdims=True) + 1e-8)
    weighted = jnp.sum(knowledge_vectors * norm_w[..., None], axis=1)
    h1 = jnp.maximum(weighted @ w1 + b1, 0.0)
    h2 = jnp.maximum(h1 @ w2 + b2, 0.0)
    ref = jax.nn.sigmoid(jnp.sum(h2 * w3, axis=-1) + b3[0, 0])

    assert scores.shape == (batch_size,)
    max_err = float(jnp.max(jnp.abs(scores - ref)))
    # all error sources are MXU f32-matmul rounding; sigmoid output, so 2e-3 is ample
    assert jnp.allclose(scores, ref, atol=2e-3, rtol=2e-3), max_err
    print("KERNEL_OK")
</pallas_src>

<mosaic_0001>
module attributes {stable_mosaic.version = 11 : i64} {
  func.func @_cdm_tile_kernel(%arg0: i32, %arg1: memref<128x1xi32, #tpu.memory_space<vmem>>, %arg2: memref<128x12xf32, #tpu.memory_space<vmem>>, %arg3: memref<8x384xf32, #tpu.memory_space<vmem>>, %arg4: memref<12x384xf32, #tpu.memory_space<vmem>>, %arg5: memref<384x64xf32, #tpu.memory_space<vmem>>, %arg6: memref<1x64xf32, #tpu.memory_space<vmem>>, %arg7: memref<64x32xf32, #tpu.memory_space<vmem>>, %arg8: memref<1x32xf32, #tpu.memory_space<vmem>>, %arg9: memref<1x32xf32, #tpu.memory_space<vmem>>, %arg10: memref<1x1xf32, #tpu.memory_space<vmem>>, %arg11: memref<1x1x128xf32, #tpu.memory_space<vmem>>) attributes {dimension_semantics = [#tpu.dimension_semantics<parallel>], iteration_bounds = array<i64: 3>, scalar_prefetch = 0 : i64, scratch_operands = 0 : i64, tpu.core_type = #tpu.core_type<tc>, window_params = [{transform_indices = @transform_0, window_bounds = array<i64: 128, 1>}, {transform_indices = @transform_1, window_bounds = array<i64: 128, 12>}, {pipeline_mode = #tpu.pipeline_mode<synchronous>, transform_indices = @transform_2, window_bounds = array<i64: 8, 384>}, {pipeline_mode = #tpu.pipeline_mode<synchronous>, transform_indices = @transform_3, window_bounds = array<i64: 12, 384>}, {pipeline_mode = #tpu.pipeline_mode<synchronous>, transform_indices = @transform_4, window_bounds = array<i64: 384, 64>}, {pipeline_mode = #tpu.pipeline_mode<synchronous>, transform_indices = @transform_5, window_bounds = array<i64: 1, 64>}, {pipeline_mode = #tpu.pipeline_mode<synchronous>, transform_indices = @transform_6, window_bounds = array<i64: 64, 32>}, {pipeline_mode = #tpu.pipeline_mode<synchronous>, transform_indices = @transform_7, window_bounds = array<i64: 1, 32>}, {pipeline_mode = #tpu.pipeline_mode<synchronous>, transform_indices = @transform_8, window_bounds = array<i64: 1, 32>}, {pipeline_mode = #tpu.pipeline_mode<synchronous>, transform_indices = @transform_9, window_bounds = array<i64: 1, 1>}, {transform_indices = @transform_10, window_bounds = array<i64: 1, 1, 128>}]} {
    %c0 = arith.constant 0 : index
    %c0_0 = arith.constant 0 : index
    %0 = vector.load %arg1[%c0, %c0_0] : memref<128x1xi32, #tpu.memory_space<vmem>>, vector<128x1xi32>
    %1 = tpu.iota {dimensions = array<i32: 1>} : vector<128x8xi32>
    %2 = vector.broadcast %0 : vector<128x1xi32> to vector<128x8xi32>
    %3 = arith.cmpi eq, %2, %1 : vector<128x8xi32>
    %4 = arith.extui %3 : vector<128x8xi1> to vector<128x8xi32>
    %5 = arith.sitofp %4 : vector<128x8xi32> to vector<128x8xf32>
    %c0_1 = arith.constant 0 : index
    %c0_2 = arith.constant 0 : index
    %6 = vector.load %arg3[%c0_1, %c0_2] : memref<8x384xf32, #tpu.memory_space<vmem>>, vector<8x384xf32>
    %cst = arith.constant dense<0.000000e+00> : vector<128x384xf32>
    %7 = tpu.matmul %5, %6, %cst {dimension_numbers = #tpu.dot_dimension_numbers<[1], [0], [0], [1], [0, 0, 1, 1], [], []>} : vector<128x8xf32>, vector<8x384xf32>, vector<128x384xf32> -> vector<128x384xf32>
    %c0_3 = arith.constant 0 : index
    %c0_4 = arith.constant 0 : index
    %8 = vector.load %arg2[%c0_3, %c0_4] : memref<128x12xf32, #tpu.memory_space<vmem>>, vector<128x12xf32>
    %c0_5 = arith.constant 0 : index
    %c0_6 = arith.constant 0 : index
    %9 = vector.load %arg4[%c0_5, %c0_6] : memref<12x384xf32, #tpu.memory_space<vmem>>, vector<12x384xf32>
    %cst_7 = arith.constant dense<0.000000e+00> : vector<128x384xf32>
    %10 = tpu.matmul %8, %9, %cst_7 {dimension_numbers = #tpu.dot_dimension_numbers<[1], [0], [0], [1], [0, 0, 1, 1], [], []>} : vector<128x12xf32>, vector<12x384xf32>, vector<128x384xf32> -> vector<128x384xf32>
    %11 = arith.mulf %7, %10 : vector<128x384xf32>
    %c0_8 = arith.constant 0 : index
    %c0_9 = arith.constant 0 : index
    %12 = vector.load %arg5[%c0_8, %c0_9] : memref<384x64xf32, #tpu.memory_space<vmem>>, vector<384x64xf32>
    %cst_10 = arith.constant dense<0.000000e+00> : vector<128x64xf32>
    %13 = tpu.matmul %11, %12, %cst_10 {dimension_numbers = #tpu.dot_dimension_numbers<[1], [0], [0], [1], [0, 0, 1, 1], [], []>} : vector<128x384xf32>, vector<384x64xf32>, vector<128x64xf32> -> vector<128x64xf32>
    %c0_11 = arith.constant 0 : index
    %c0_12 = arith.constant 0 : index
    %14 = vector.load %arg6[%c0_11, %c0_12] : memref<1x64xf32, #tpu.memory_space<vmem>>, vector<1x64xf32>
    %15 = vector.broadcast %14 : vector<1x64xf32> to vector<128x64xf32>
    %16 = arith.addf %13, %15 : vector<128x64xf32>
    %cst_13 = arith.constant 0.000000e+00 : f32
    %17 = vector.broadcast %cst_13 : f32 to vector<128x64xf32>
    %18 = arith.maximumf %16, %17 : vector<128x64xf32>
    %c0_14 = arith.constant 0 : index
    %c0_15 = arith.constant 0 : index
    %19 = vector.load %arg7[%c0_14, %c0_15] : memref<64x32xf32, #tpu.memory_space<vmem>>, vector<64x32xf32>
    %cst_16 = arith.constant dense<0.000000e+00> : vector<128x32xf32>
    %20 = tpu.matmul %18, %19, %cst_16 {dimension_numbers = #tpu.dot_dimension_numbers<[1], [0], [0], [1], [0, 0, 1, 1], [], []>} : vector<128x64xf32>, vector<64x32xf32>, vector<128x32xf32> -> vector<128x32xf32>
    %c0_17 = arith.constant 0 : index
    %c0_18 = arith.constant 0 : index
    %21 = vector.load %arg8[%c0_17, %c0_18] : memref<1x32xf32, #tpu.memory_space<vmem>>, vector<1x32xf32>
    %22 = vector.broadcast %21 : vector<1x32xf32> to vector<128x32xf32>
    %23 = arith.addf %20, %22 : vector<128x32xf32>
    %cst_19 = arith.constant 0.000000e+00 : f32
    %24 = vector.broadcast %cst_19 : f32 to vector<128x32xf32>
    %25 = arith.maximumf %23, %24 : vector<128x32xf32>
    %c0_20 = arith.constant 0 : index
    %c0_21 = arith.constant 0 : index
    %26 = vector.load %arg9[%c0_20, %c0_21] : memref<1x32xf32, #tpu.memory_space<vmem>>, vector<1x32xf32>
    %cst_22 = arith.constant dense<0.000000e+00> : vector<1x128xf32>
    %27 = tpu.matmul %26, %25, %cst_22 {dimension_numbers = #tpu.dot_dimension_numbers<[1], [1], [0], [0], [0, 0, 1, 0], [], []>} : vector<1x32xf32>, vector<128x32xf32>, vector<1x128xf32> -> vector<1x128xf32>
    %c0_23 = arith.constant 0 : index
    %c0_24 = arith.constant 0 : index
    %28 = vector.load %arg10[%c0_23, %c0_24] : memref<1x1xf32, #tpu.memory_space<vmem>>, vector<1x1xf32>
    %29 = vector.broadcast %28 : vector<1x1xf32> to vector<1x128xf32>
    %30 = arith.addf %27, %29 : vector<1x128xf32>
    %31 = arith.negf %30 : vector<1x128xf32>
    %32 = math.exp %31 : vector<1x128xf32>
    %cst_25 = arith.constant 1.000000e+00 : f32
    %33 = vector.broadcast %cst_25 : f32 to vector<1x128xf32>
    %34 = arith.addf %33, %32 : vector<1x128xf32>
    %35 = arith.divf %33, %34 : vector<1x128xf32>
    %36 = vector.shape_cast %35 : vector<1x128xf32> to vector<1x1x128xf32>
    %c0_26 = arith.constant 0 : index
    %c0_27 = arith.constant 0 : index
    %c0_28 = arith.constant 0 : index
    %37 = vector.load %arg11[%c0_26, %c0_27, %c0_28] : memref<1x1x128xf32, #tpu.memory_space<vmem>>, vector<1x1x128xf32>
    tpu.vector_store %arg11[%c0_26, %c0_27, %c0_28], %36 {strides = array<i32>} : memref<1x1x128xf32, #tpu.memory_space<vmem>>, vector<1x1x128xf32>,
    return
  }
  func.func @transform_0(%arg0: i32) -> (i32, i32) {
    %c0_i32 = arith.constant 0 : i32
    %c0_i32_0 = arith.constant 0 : i32
    return %arg0, %c0_i32 : i32, i32
  }
  func.func @transform_1(%arg0: i32) -> (i32, i32) {
    %c0_i32 = arith.constant 0 : i32
    %c0_i32_0 = arith.constant 0 : i32
    return %arg0, %c0_i32 : i32, i32
  }
  func.func @transform_2(%arg0: i32) -> (i32, i32) {
    %c0_i32 = arith.constant 0 : i32
    %c0_i32_0 = arith.constant 0 : i32
    %c0_i32_1 = arith.constant 0 : i32
    return %c0_i32, %c0_i32_0 : i32, i32
  }
  func.func @transform_3(%arg0: i32) -> (i32, i32) {
    %c0_i32 = arith.constant 0 : i32
    %c0_i32_0 = arith.constant 0 : i32
    %c0_i32_1 = arith.constant 0 : i32
    return %c0_i32, %c0_i32_0 : i32, i32
  }
  func.func @transform_4(%arg0: i32) -> (i32, i32) {
    %c0_i32 = arith.constant 0 : i32
    %c0_i32_0 = arith.constant 0 : i32
    %c0_i32_1 = arith.constant 0 : i32
    return %c0_i32, %c0_i32_0 : i32, i32
  }
  func.func @transform_5(%arg0: i32) -> (i32, i32) {
    %c0_i32 = arith.constant 0 : i32
    %c0_i32_0 = arith.constant 0 : i32
    %c0_i32_1 = arith.constant 0 : i32
    return %c0_i32, %c0_i32_0 : i32, i32
  }
  func.func @transform_6(%arg0: i32) -> (i32, i32) {
    %c0_i32 = arith.constant 0 : i32
    %c0_i32_0 = arith.constant 0 : i32
    %c0_i32_1 = arith.constant 0 : i32
    return %c0_i32, %c0_i32_0 : i32, i32
  }
  func.func @transform_7(%arg0: i32) -> (i32, i32) {
    %c0_i32 = arith.constant 0 : i32
    %c0_i32_0 = arith.constant 0 : i32
    %c0_i32_1 = arith.constant 0 : i32
    return %c0_i32, %c0_i32_0 : i32, i32
  }
  func.func @transform_8(%arg0: i32) -> (i32, i32) {
    %c0_i32 = arith.constant 0 : i32
    %c0_i32_0 = arith.constant 0 : i32
    %c0_i32_1 = arith.constant 0 : i32
    return %c0_i32, %c0_i32_0 : i32, i32
  }
  func.func @transform_9(%arg0: i32) -> (i32, i32) {
    %c0_i32 = arith.constant 0 : i32
    %c0_i32_0 = arith.constant 0 : i32
    %c0_i32_1 = arith.constant 0 : i32
    return %c0_i32, %c0_i32_0 : i32, i32
  }
  func.func @transform_10(%arg0: i32) -> (i32, i32, i32) {
    %c0_i32 = arith.constant 0 : i32
    %c0_i32_0 = arith.constant 0 : i32
    %c0_i32_1 = arith.constant 0 : i32
    return %arg0, %c0_i32, %c0_i32_0 : i32, i32, i32
  }
}

</mosaic_0001>

<bundles_post_ra>
// kernel: tpu_custom_call.1
= control target key start
LH: loop header
LB: loop body
LE: loop exit
PB: predicated region body
PF: predicated region fallthrough
CT: control target
= control target key end

     0   :  { %s3583_s0 = inlined_call_operand.vmem [shape: s32[384,1], index: 0, kind: input, shape index: {}]   ;;  %s3584_s1 = inlined_call_operand.vmem [shape: f32[384,12], index: 1, kind: input, shape index: {}]   ;;  %s3585_s2 = inlined_call_operand.vmem [shape: f32[8,384], index: 2, kind: input, shape index: {}]   ;;  %s3586_s3 = inlined_call_operand.vmem [shape: f32[12,384], index: 3, kind: input, shape index: {}]   ;;  %s3587_s4 = inlined_call_operand.vmem [shape: f32[384,64], index: 4, kind: input, shape index: {}]   ;;  %s3588_s5 = inlined_call_operand.vmem [shape: f32[1,64], index: 5, kind: input, shape index: {}]   ;;  %s3589_s6 = inlined_call_operand.vmem [shape: f32[64,32], index: 6, kind: input, shape index: {}]   ;;  %s3590_s7 = inlined_call_operand.vmem [shape: f32[1,32], index: 7, kind: input, shape index: {}]   ;;  %s3591_s8 = inlined_call_operand.vmem [shape: f32[1,32], index: 8, kind: input, shape index: {}]   ;;  %s3592_s9 = inlined_call_operand.<no memory space> [shape: f32[1,1], index: 9, kind: input, shape index: {}]   ;;  %s3593_s10 = inlined_call_operand.hbm [shape: f32[3,1,128], index: 10, kind: output, shape index: {}]  }
   0x1   :  { %v15_v0 = vstv %s3592_s9 }
   0x2   :  { %16 = vst [vmem:[#allocation2] sm:$0x1] %v15_v0 }
   0x3   :  { %17 = vsyncpa [#allocation4], 0 }
   0x4   :  { %19 = vsyncpa [#allocation4 + $0x1], 0  ;;  %s2901_s15 = smov 0   ;;  %s2903_s16 = smov 0  }
   0x5   :  { %s2905_s17 = smov 0   ;;  %s2907_s18 = smov 0  }
   0x6 LB: > { %s2095_s9 = sadd.s32 4294967295, %s2835_s18   ;;  %s2096_s19 = sadd.s32 4294967294, %s2835_s18   ;;  %s2835_s18 = sphi %s2907_s18, %s3603_s18   ;;  %s2831_s17 = sphi %s2905_s17, %s3602_s17   ;;  %s2827_s16 = sphi %s2903_s16, %s3601_s16   ;;  %s2823_s15 = sphi %s2901_s15, %s3600_s15  }
   0x7   : > { %s2924_s20 = sadd.s32 1, %s2835_s18   ;;  %s252_s21 = sadd.s32 1, %s2831_s17 }
   0x8   : > { %s249_s22 = ssub.s32 %s2835_s18, %s2924_s20  ;;  %p262_p0 = scmp.ne.s32.totalorder %s2831_s17, %s2827_s16 }
   0x9   : > { %p250_p1 = scmp.eq.s32.totalorder %s249_s22, 0  ;;  %p263_p2 = scmp.eq.s32.totalorder %s2095_s9, 2 }
   0xa   : > { %p268_p3 = scmp.ne.s32.totalorder %s2827_s16, %s2823_s15  ;;  %p269_p4 = scmp.eq.s32.totalorder %s2096_s19, 2 }
   0xb   : > { %s2934_s23 = scalar_select %p250_p1, %s2831_s17, %s252_s21  }
   0xc   : > { %p2936_p5 = por %p263_p2, %p262_p0  ;;  %p2940_p6 = por %p269_p4, %p268_p3 }
   0xd   : > { %p2099_p7 = scmp.ge.s32.totalorder %s2835_s18, 1  ;;  %p329_p8 = scmp.lt.s32.totalorder %s2835_s18, 4 }
   0xf   : > { %p330_p9 = pnand %p2099_p7, %p329_p8 }
  0x10   : > { %s2946_s26 = sshll.u32 (!%p330_p9), %s2095_s9, 4  ;;  %v2837_v1 = vmov (!%p330_p9), 0   ;;  %v2838_v2 = vmov (!%p330_p9), 0.0   ;;  %v498_v8 = vld [vmem:[%s3585_s2 + $0x8] sm:$0xff] (!%p330_p9)  ;;  %v497_v9 = vld [vmem:[%s3585_s2] sm:$0xff] (!%p330_p9)  ;;  %v873_v11 = vld [vmem:[%s3586_s3 + $0x10] sm:$0xff] (!%p330_p9)  ;;  %v399_v30 = vlaneseq (!%p330_p9) }
  0x11   : > { %333 = sbr.rel (%p330_p9) target bundleno = 1193 (0x4a9), region = 60  ;;  %2768 = vset.pattern.permute.xlu1 (!%p330_p9), %v2837_v1  ;;  %2767 = vset.pattern.permute.xlu0 (!%p330_p9), %v2837_v1  ;;  %p372_p10 = scmp.lt.s32.totalorder (!%p330_p9), %s2946_s26, 47  ;;  %v876_v12 = vld [vmem:[%s3586_s3 + $0x28] sm:$0xf] (!%p330_p9)  ;;  %vm926_vm0 = vcmask (!%p330_p9), 1043456   ;;  %v499_v14 = vld [vmem:[%s3585_s2 + $0x10] sm:$0xff] (!%p330_p9) }
  0x12   : > { %613 = vmatprep.mubr.f32.mxu0 (!%p330_p9), %v2838_v2  ;;  %549 = vmatprep.subr.mxu0 (!%p330_p9), %v498_v8  ;;  %v2605_v13 = vpack.c.bf16 (!%p330_p9), %v876_v12, %v873_v11  ;;  %vm2839_vm1 = vmmov (!%p330_p9), 1   ;;  %v872_v26 = vld [vmem:[%s3586_s3 + $0x8] sm:$0xff] (!%p330_p9)  ;;  %v875_v27 = vld [vmem:[%s3586_s3 + $0x20] sm:$0xf] (!%p330_p9)  ;;  %v3007_v31 = vand.u32 (!%p330_p9), 127, %v399_v30  ;;  %vm500_vm3 = vcmask (!%p330_p9), 64512   ;;  %s3541_s9 = scalar_lea.hbm (!%p330_p9), %s3593_s10, %s2946_s26 }
  0x13   : > { %550 = vmatpush1.msra.mxu0 (!%p330_p9), %v497_v9  ;;  %2414 = vmatprep.subr.mxu1 (!%p330_p9), %v499_v14  ;;  %vm2982_vm2 = vmpackc.low (!%p330_p9), %vm926_vm0, %vm2839_vm1  ;;  %v2599_v28 = vpack.c.bf16 (!%p330_p9), %v875_v27, %v872_v26  ;;  %v1877_v29 = vld [vmem:[#allocation2] sm:$0x1] (!%p330_p9)  ;;  %v874_v36 = vld [vmem:[%s3586_s3 + $0x18] sm:$0xf] (!%p330_p9)  ;;  %s369_s12 = sand.u32 (!%p330_p9), 1, %s2827_s16   ;;  %s2842_s21 = smov (!%p330_p9), [#allocation3]  }
  0x14   : > { %2607 = vmatprep.subr.msk.bf16.mxu0 (!%p330_p9), %vm2982_vm2, %v2605_v13  ;;  %2415 = vmatpush3.msra.mxu1 (!%p330_p9), %v499_v14  ;;  %v871_v35 = vld [vmem:[%s3586_s3] sm:$0xff] (!%p330_p9)  ;;  %v1291_v27 = vld [vmem:[%s3587_s4 + $0x8] sm:$0xff] (!%p330_p9)  ;;  %s2017_s19 = scalar_lea.sflag (!%p330_p9), [#allocation4], %s369_s12  ;;  %s2777_s22 = sshll.u32 (!%p330_p9), %s2842_s21, 4  ;;  %s2778_s22 = int_to_ptr.vmem [resolvable:$false] %s2777_s22 }
  0x15   : > { %2601 = vmatprep.subr.msk.bf16.mxu1 (!%p330_p9), %vm2982_vm2, %v2599_v28  ;;  %v2602_v40 = vpack.c.bf16 (!%p330_p9), %v874_v36, %v871_v35  ;;  %v1290_v26 = vld [vmem:[%s3587_s4] sm:$0xff] (!%p330_p9)  ;;  %v1324_v36 = vld [vmem:[%s3587_s4 + $0x110] sm:$0xff] (!%p330_p9)  ;;  %s2779_s29 = scalar_lea.vmem (!%p330_p9), %s2778_s22, 32 }
  0x16   : > { %v2613_v28 = vpack.c.bf16 (!%p330_p9), %v1291_v27, %v1290_v26  ;;  %v1336_v27 = vld [vmem:[%s3587_s4 + $0x170] sm:$0xff] (!%p330_p9) }
  0x18   : > { %s2951_s27 = scalar_select %p372_p10, %s2946_s26, 47 }
  0x1a   : > { %s2101_s28 = sshll.u32 %s2951_s27, 3  ;;  %s370_s27 = scalar_lea.vmem [#allocation3], %s369_s12 }
  0x1b   : > { %s2959_s11 = scalar_lea.vmem %s3583_s0, %s2101_s28  ;;  %s3086_s13 = scalar_lea.vmem %s3584_s1, %s2101_s28 }
  0x1c   : > { %v385_v3 = vld [vmem:[%s2959_s11 + $0x10] sm:$0xff]  ;;  %v383_v4 = vld [vmem:[%s2959_s11] sm:$0xff]  ;;  %v386_v5 = vld [vmem:[%s2959_s11 + $0x18] sm:$0xff] }
  0x1d   : > { %408 = vperm.xlu1 %2768, %v385_v3   ;;  %402 = vperm.xlu0 %2767, %v383_v4   ;;  %v384_v6 = vld [vmem:[%s2959_s11 + $0x8] sm:$0xff]  ;;  %v387_v10 = vld [vmem:[%s2959_s11 + $0x20] sm:$0xff]  ;;  %v390_v16 = vld [vmem:[%s2959_s11 + $0x38] sm:$0xff] }
  0x1e   : > { %v388_v7 = vld [vmem:[%s2959_s11 + $0x28] sm:$0xff]  ;;  %v389_v17 = vld [vmem:[%s2959_s11 + $0x30] sm:$0xff]  ;;  %v391_v19 = vld [vmem:[%s2959_s11 + $0x40] sm:$0xff] }
  0x1f   : > { %v392_v18 = vld [vmem:[%s2959_s11 + $0x48] sm:$0xff]  ;;  %v394_v20 = vld [vmem:[%s2959_s11 + $0x58] sm:$0xff]  ;;  %v393_v21 = vld [vmem:[%s2959_s11 + $0x50] sm:$0xff] }
  0x20   : > { %v396_v22 = vld [vmem:[%s2959_s11 + $0x68] sm:$0xff]  ;;  %v395_v23 = vld [vmem:[%s2959_s11 + $0x60] sm:$0xff]  ;;  %v398_v24 = vld [vmem:[%s2959_s11 + $0x78] sm:$0xff] }
  0x21   : > { %411 = vperm.xlu1 %2768, %v386_v5   ;;  %405 = vperm.xlu0 %2767, %v384_v6   ;;  %v397_v25 = vld [vmem:[%s2959_s11 + $0x70] sm:$0xff]  ;;  %v855_v4 = vld [vmem:[%s3086_s13] sm:$0xff]  ;;  %v856_v5 = vld [vmem:[%s3086_s13 + $0x8] sm:$0xff] }
  0x22   : > { %v857_v6 = vld [vmem:[%s3086_s13 + $0x10] sm:$0xff]  ;;  %v859_v8 = vld [vmem:[%s3086_s13 + $0x20] sm:$0xff]  ;;  %v860_v9 = vld [vmem:[%s3086_s13 + $0x28] sm:$0xff] }
  0x23   : > { %v862_v11 = vld [vmem:[%s3086_s13 + $0x38] sm:$0xff]  ;;  %v863_v12 = vld [vmem:[%s3086_s13 + $0x40] sm:$0xff]  ;;  %v865_v14 = vld [vmem:[%s3086_s13 + $0x50] sm:$0xff] }
  0x24   : > { %v866_v15 = vld [vmem:[%s3086_s13 + $0x58] sm:$0xff] }
  0x25   : > { %417 = vperm.xlu1 %2768, %v388_v7   ;;  %414 = vperm.xlu0 %2767, %v387_v10   ;;  %v858_v7 = vld [vmem:[%s3086_s13 + $0x18] sm:$0xff]  ;;  %v861_v10 = vld [vmem:[%s3086_s13 + $0x30] sm:$0xff] }
  0x29   : > { %423 = vperm.xlu1 %2768, %v390_v16   ;;  %420 = vperm.xlu0 %2767, %v389_v17   ;;  %v867_v16 = vld [vmem:[%s3086_s13 + $0x60] sm:$0xff]  ;;  %v868_v17 = vld [vmem:[%s3086_s13 + $0x68] sm:$0xff] }
  0x2d   : > { %429 = vperm.xlu1 %2768, %v392_v18   ;;  %426 = vperm.xlu0 %2767, %v391_v19   ;;  %v869_v18 = vld [vmem:[%s3086_s13 + $0x70] sm:$0xff]  ;;  %v1322_v19 = vld [vmem:[%s3587_s4 + $0x100] sm:$0xff] }
  0x31   : > { %435 = vperm.xlu1 %2768, %v394_v20   ;;  %432 = vperm.xlu0 %2767, %v393_v21   ;;  %v1323_v20 = vld [vmem:[%s3587_s4 + $0x108] sm:$0xff]  ;;  %v870_v21 = vld [vmem:[%s3086_s13 + $0x78] sm:$0xff] }
  0x35   : > { %441 = vperm.xlu1 %2768, %v396_v22   ;;  %438 = vperm.xlu0 %2767, %v395_v23   ;;  %v2643_v22 = vpack.c.bf16 %v1323_v20, %v1322_v19  ;;  %v1306_v23 = vld [vmem:[%s3587_s4 + $0x80] sm:$0xff]  ;;  %v1331_v19 = vld [vmem:[%s3587_s4 + $0x148] sm:$0xff] }
  0x39   : > { %447 = vperm.xlu1 %2768, %v398_v24   ;;  %444 = vperm.xlu0 %2767, %v397_v25   ;;  %v1307_v24 = vld [vmem:[%s3587_s4 + $0x88] sm:$0xff] }
  0x3a   : > { %v2611_v25 = vpack.c.bf16 %v1307_v24, %v1306_v23  ;;  %v1334_v24 = vld [vmem:[%s3587_s4 + $0x160] sm:$0xff] }
  0x3d   : > { %1880 = vperm.xlu0 %2767, %v1877_v29   ;;  %v1308_v29 = vld [vmem:[%s3587_s4 + $0x90] sm:$0xff] }
  0x9c   : > { %v409_v32 = vpop.permute.xlu1 %408  ;;  %v403_v33 = vpop.permute.xlu0 %402 }
  0x9d   : > { %vm449_vm4 = vcmp.eq.s32.totalorder %v403_v33, %v3007_v31  ;;  %vm451_vm5 = vcmp.eq.s32.totalorder %v409_v32, %v3007_v31  ;;  %v1292_v33 = vld [vmem:[%s3587_s4 + $0x10] sm:$0xff] }
  0x9e   : > { %v2104_v34 = vsel %vm449_vm4, 1.0, %v2838_v2  ;;  %v2106_v39 = vsel %vm451_vm5, 1.0, %v2838_v2  ;;  %vm877_vm5 = vcmask 97280  }
  0x9f   : > { %2120 = vmatmul.mubr.msk.f32.vlgmr.msra.gmra.mrb[0].mxu0 %vm500_vm3, %v2104_v34  ;;  %2416 = vmatprep.mubr.msk.f32.mxu1 %vm500_vm3, %v2104_v34  ;;  %v1293_v34 = vld [vmem:[%s3587_s4 + $0x18] sm:$0xff] }
  0xa0   : > { %v412_v37 = vpop.permute.xlu1 %411  ;;  %2610 = vmatpush3.bf16.msk.msra.mxu0 %vm2982_vm2, %v2605_v13  ;;  %v406_v38 = vpop.permute.xlu0 %405  ;;  %619 = vmatprep.mubr.f32.mxu0 %v2838_v2  ;;  %v864_v13 = vld [vmem:[%s3086_s13 + $0x48] sm:$0xff]  ;;  %v2617_v35 = vpack.c.bf16 %v1293_v34, %v1292_v33  ;;  %s2029_s13 = sshll.u32 %s370_s27, 4  ;;  %s3543_s13 = int_to_ptr.vmem [resolvable:$true] %s2029_s13 }
  0xa1   : > { %vm452_vm6 = vcmp.eq.s32.totalorder %v412_v37, %v3007_v31  ;;  %vm450_vm7 = vcmp.eq.s32.totalorder %v406_v38, %v3007_v31  ;;  %2612 = vmatprep.subr.bf16.mxu0 %v2611_v25  ;;  %v1325_v37 = vld [vmem:[%s3587_s4 + $0x118] sm:$0xff]  ;;  %v1335_v25 = vld [vmem:[%s3587_s4 + $0x168] sm:$0xff]  ;;  %s2773_s11 = scalar_lea.vmem %s3543_s13, 16  ;;  %p2780_p0 = scmp.lt.s32.totalorder %s3543_s13, %s2778_s22 }
  0xa2   : > { %v2105_v41 = vsel %vm450_vm7, 1.0, %v2838_v2  ;;  %v2107_v42 = vsel %vm452_vm6, 1.0, %v2838_v2  ;;  %v2647_v38 = vpack.c.bf16 %v1325_v37, %v1324_v36  ;;  %v2667_v26 = vpack.c.bf16 %v1335_v25, %v1334_v24  ;;  %p2774_p11 = scmp.ne.s32.totalorder %s3543_s13, %s2773_s11  ;;  %p2781_p1 = scmp.lt.s32.totalorder %s2779_s29, %s2773_s11 }
  0xa3   : > { %2121 = vmatmul.mubr.msk.f32.gmra.mrb[2].mxu0 %vm500_vm3, %v2105_v41  ;;  %2417 = vmatmul.mubr.msk.f32.vlgmr.msra.gmra.mrb[0].mxu1 %vm500_vm3, %v2105_v41  ;;  %vm2841_vm6 = vmmov 0   ;;  %vm1887_vm7 = vcmask 261120  }
  0xa4   : > { %v418_v43 = vpop.permute.xlu1 %417  ;;  %v415_v44 = vpop.permute.xlu0 %414  ;;  %625 = vmatprep.mubr.f32.mxu0 %v2838_v2  ;;  %2419 = vmatprep.mubr.msk.f32.mxu1 %vm500_vm3, %v2106_v39  ;;  %p2775_p12 = pnand %p2774_p11, %p2936_p5  ;;  %p2782_p2 = por %p2781_p1, %p2780_p0 }
  0xa5   : > { %vm453_vm8 = vcmp.eq.s32.totalorder %v415_v44, %v3007_v31  ;;  %2604 = vmatpush1.bf16.msk.msra.mxu1 %vm2982_vm2, %v2602_v40  ;;  %vm454_vm9 = vcmp.eq.s32.totalorder %v418_v43, %v3007_v31  ;;  %v1311_v40 = vld [vmem:[%s3587_s4 + $0xa8] sm:$0xff] }
  0xa6   : > { %v2108_v45 = vsel %vm453_vm8, 1.0, %v2838_v2  ;;  %v2109_v48 = vsel %vm454_vm9, 1.0, %v2838_v2  ;;  %2644 = vmatprep.subr.bf16.mxu1 %v2643_v22  ;;  %v1295_v43 = vld [vmem:[%s3587_s4 + $0x28] sm:$0xff]  ;;  %vm3491_vm8 = vmpackc.low %vm1887_vm7, %vm1887_vm7  ;;  %p2776_p13 = pneg %p2775_p12 }
  0xa7   : > { %2122 = vmatmul.mubr.msk.f32.gmra.mrb[4].mxu0 %vm500_vm3, %v2106_v39  ;;  %2420 = vmatmul.mubr.msk.f32.gmra.mrb[2].mxu1 %vm500_vm3, %v2107_v42  ;;  %v1310_v39 = vld [vmem:[%s3587_s4 + $0xa0] sm:$0xff] }
  0xa8   : > { %v424_v46 = vpop.permute.xlu1 %423  ;;  %2422 = vmatprep.mubr.msk.f32.mxu1 %vm500_vm3, %v2108_v45  ;;  %v421_v47 = vpop.permute.xlu0 %420  ;;  %631 = vmatprep.mubr.f32.mxu0 %v2838_v2  ;;  %v2619_v41 = vpack.c.bf16 %v1311_v40, %v1310_v39  ;;  %p2783_p3 = pnand %p2782_p2, %p2776_p13 }
  0xa9   : > { %vm455_vm10 = vcmp.eq.s32.totalorder %v421_v47, %v3007_v31  ;;  %vm456_vm11 = vcmp.eq.s32.totalorder %v424_v46, %v3007_v31  ;;  %v1313_v46 = vld [vmem:[%s3587_s4 + $0xb8] sm:$0xff] }
  0xaa   : > { %v2110_v49 = vsel %vm455_vm10, 1.0, %v2838_v2  ;;  %v2111_v52 = vsel %vm456_vm11, 1.0, %v2838_v2 }
  0xab   : > { %2123 = vmatmul.mubr.msk.f32.gmra.mrb[6].mxu0 %vm500_vm3, %v2107_v42  ;;  %2423 = vmatmul.mubr.msk.f32.gmra.mrb[4].mxu1 %vm500_vm3, %v2109_v48  ;;  %v1294_v42 = vld [vmem:[%s3587_s4 + $0x20] sm:$0xff] }
  0xac   : > { %v430_v50 = vpop.permute.xlu1 %429  ;;  %2425 = vmatprep.mubr.msk.f32.mxu1 %vm500_vm3, %v2110_v49  ;;  %v427_v51 = vpop.permute.xlu0 %426  ;;  %637 = vmatprep.mubr.f32.mxu0 %v2838_v2  ;;  %v2621_v44 = vpack.c.bf16 %v1295_v43, %v1294_v42 }
  0xad   : > { %vm457_vm12 = vcmp.eq.s32.totalorder %v427_v51, %v3007_v31  ;;  %vm458_vm13 = vcmp.eq.s32.totalorder %v430_v50, %v3007_v31  ;;  %v1326_v51 = vld [vmem:[%s3587_s4 + $0x120] sm:$0xff] }
  0xae   : > { %v2112_v53 = vsel %vm457_vm12, 1.0, %v2838_v2  ;;  %v2113_v56 = vsel %vm458_vm13, 1.0, %v2838_v2 }
  0xaf   : > { %2124 = vmatmul.mubr.msk.f32.gmra.mrb[8].mxu0 %vm500_vm3, %v2108_v45  ;;  %2426 = vmatmul.mubr.msk.f32.gmra.mrb[6].mxu1 %vm500_vm3, %v2111_v52  ;;  %v1312_v45 = vld [vmem:[%s3587_s4 + $0xb0] sm:$0xff] }
  0xb0   : > { %v436_v54 = vpop.permute.xlu1 %435  ;;  %2428 = vmatprep.mubr.msk.f32.mxu1 %vm500_vm3, %v2112_v53  ;;  %v433_v55 = vpop.permute.xlu0 %432  ;;  %643 = vmatprep.mubr.f32.mxu0 %v2838_v2  ;;  %v2623_v47 = vpack.c.bf16 %v1313_v46, %v1312_v45 }
  0xb1   : > { %vm459_vm14 = vcmp.eq.s32.totalorder %v433_v55, %v3007_v31  ;;  %vm460_vm15 = vcmp.eq.s32.totalorder %v436_v54, %v3007_v31  ;;  %v1314_v54 = vld [vmem:[%s3587_s4 + $0xc0] sm:$0xff]  ;;  %v1315_v55 = vld [vmem:[%s3587_s4 + $0xc8] sm:$0xff] }
  0xb2   : > { %v2114_v57 = vsel %vm459_vm14, 1.0, %v2838_v2  ;;  %v2115_v60 = vsel %vm460_vm15, 1.0, %v2838_v2 }
  0xb3   : > { %2125 = vmatmul.mubr.msk.f32.gmra.mrb[10].mxu0 %vm500_vm3, %v2109_v48  ;;  %2429 = vmatmul.mubr.msk.f32.gmra.mrb[8].mxu1 %vm500_vm3, %v2113_v56  ;;  %v1296_v48 = vld [vmem:[%s3587_s4 + $0x30] sm:$0xff] }
  0xb4   : > { %v442_v58 = vpop.permute.xlu1 %441  ;;  %2431 = vmatprep.mubr.msk.f32.mxu1 %vm500_vm3, %v2114_v57  ;;  %v439_v59 = vpop.permute.xlu0 %438  ;;  %649 = vmatprep.mubr.f32.mxu0 %v2838_v2 }
  0xb5   : > { %vm461_vm0 = vcmp.eq.s32.totalorder %v439_v59, %v3007_v31  ;;  %vm462_vm1 = vcmp.eq.s32.totalorder %v442_v58, %v3007_v31  ;;  %v1299_v58 = vld [vmem:[%s3587_s4 + $0x48] sm:$0xff] }
  0xb6   : > { %v2116_v61 = vsel %vm461_vm0, 1.0, %v2838_v2  ;;  %v2117_v0 = vsel %vm462_vm1, 1.0, %v2838_v2 }
  0xb7   : > { %2126 = vmatmul.mubr.msk.f32.gmra.mrb[12].mxu0 %vm500_vm3, %v2110_v49  ;;  %2432 = vmatmul.mubr.msk.f32.gmra.mrb[10].mxu1 %vm500_vm3, %v2115_v60  ;;  %v1297_v49 = vld [vmem:[%s3587_s4 + $0x38] sm:$0xff] }
  0xb8   : > { %v448_v62 = vpop.permute.xlu1 %447  ;;  %2434 = vmatprep.mubr.msk.f32.mxu1 %vm500_vm3, %v2116_v61  ;;  %v445_v63 = vpop.permute.xlu0 %444  ;;  %655 = vmatprep.mubr.f32.mxu0 %v2838_v2  ;;  %v2625_v50 = vpack.c.bf16 %v1297_v49, %v1296_v48 }
  0xb9   : > { %vm463_vm2 = vcmp.eq.s32.totalorder %v445_v63, %v3007_v31  ;;  %vm464_vm4 = vcmp.eq.s32.totalorder %v448_v62, %v3007_v31  ;;  %v1309_v31 = vld [vmem:[%s3587_s4 + $0x98] sm:$0xff]  ;;  %v1300_v63 = vld [vmem:[%s3587_s4 + $0x50] sm:$0xff] }
  0xba   : > { %v2118_v1 = vsel %vm463_vm2, 1.0, %v2838_v2  ;;  %v2119_v3 = vsel %vm464_vm4, 1.0, %v2838_v2  ;;  %v2615_v32 = vpack.c.bf16 %v1309_v31, %v1308_v29 }
  0xbb   : > { %2127 = vmatmul.mubr.msk.f32.gmra.mrb[14].mxu0 %vm500_vm3, %v2111_v52  ;;  %2435 = vmatmul.mubr.msk.f32.gmra.mrb[12].mxu1 %vm500_vm3, %v2117_v0  ;;  %v1327_v52 = vld [vmem:[%s3587_s4 + $0x128] sm:$0xff] }
  0xbc   : > { %2437 = vmatprep.mubr.msk.f32.mxu1 %vm500_vm3, %v2118_v1  ;;  %661 = vmatprep.mubr.f32.mxu0 %v2838_v2 }
  0xbf   : > { %2128 = vmatmul.mubr.msk.f32.gmra.mrb[16].mxu0 %vm500_vm3, %v2112_v53  ;;  %2438 = vmatmul.mubr.msk.f32.gmra.mrb[14].mxu1 %vm500_vm3, %v2119_v3  ;;  %v2651_v53 = vpack.c.bf16 %v1327_v52, %v1326_v51 }
  0xc0   : > { %667 = vmatprep.mubr.f32.mxu0 %v2838_v2  ;;  %1000 = vmatprep.mubr.f32.mxu1 %v2838_v2 }
  0xc3   : > { %2129 = vmatmul.mubr.msk.f32.gmra.mrb[18].mxu0 %vm500_vm3, %v2113_v56  ;;  %2154 = vmatmul.mubr.msk.f32.vlgmr.msra.gmra.mrb[16].mxu1 %vm877_vm5, %v855_v4  ;;  %v2627_v56 = vpack.c.bf16 %v1315_v55, %v1314_v54 }
  0xc4   : > { %673 = vmatprep.mubr.f32.mxu0 %v2838_v2  ;;  %1006 = vmatprep.mubr.f32.mxu1 %v2838_v2 }
  0xc5   : > { %2646 = vmatpush3.bf16.msra.mxu1 %v2643_v22  ;;  %v1333_v22 = vld [vmem:[%s3587_s4 + $0x158] sm:$0xff] }
  0xc6   : > { %2648 = vmatprep.subr.bf16.mxu1 %v2647_v38 }
  0xc7   : > { %2130 = vmatmul.mubr.msk.f32.gmra.mrb[20].mxu0 %vm500_vm3, %v2114_v57  ;;  %2155 = vmatmul.mubr.msk.f32.gmra.mrb[18].mxu1 %vm877_vm5, %v856_v5  ;;  %v1298_v57 = vld [vmem:[%s3587_s4 + $0x40] sm:$0xff] }
  0xc8   : > { %679 = vmatprep.mubr.f32.mxu0 %v2838_v2  ;;  %1012 = vmatprep.mubr.f32.mxu1 %v2838_v2  ;;  %v2629_v59 = vpack.c.bf16 %v1299_v58, %v1298_v57 }
  0xc9   : > { %2650 = vmatpush3.bf16.msra.mxu1 %v2647_v38 }
  0xca   : > { %2652 = vmatprep.subr.bf16.mxu1 %v2651_v53 }
  0xcb   : > { %2131 = vmatmul.mubr.msk.f32.gmra.mrb[22].mxu0 %vm500_vm3, %v2115_v60  ;;  %2156 = vmatmul.mubr.msk.f32.gmra.mrb[20].mxu1 %vm877_vm5, %v857_v6  ;;  %v1316_v60 = vld [vmem:[%s3587_s4 + $0xd0] sm:$0xff] }
  0xcc   : > { %685 = vmatprep.mubr.f32.mxu0 %v2838_v2  ;;  %1018 = vmatprep.mubr.f32.mxu1 %v2838_v2 }
  0xcd   : > { %2654 = vmatpush3.bf16.msra.mxu1 %v2651_v53 }
  0xcf   : > { %2132 = vmatmul.mubr.msk.f32.gmra.mrb[24].mxu0 %vm500_vm3, %v2116_v61  ;;  %2157 = vmatmul.mubr.msk.f32.gmra.mrb[22].mxu1 %vm877_vm5, %v858_v7  ;;  %v1317_v61 = vld [vmem:[%s3587_s4 + $0xd8] sm:$0xff] }
  0xd0   : > { %691 = vmatprep.mubr.f32.mxu0 %v2838_v2  ;;  %1024 = vmatprep.mubr.f32.mxu1 %v2838_v2  ;;  %v2631_v62 = vpack.c.bf16 %v1317_v61, %v1316_v60 }
  0xd3   : > { %2133 = vmatmul.mubr.msk.f32.gmra.mrb[26].mxu0 %vm500_vm3, %v2117_v0  ;;  %2158 = vmatmul.mubr.msk.f32.gmra.mrb[24].mxu1 %vm877_vm5, %v859_v8  ;;  %v1301_v0 = vld [vmem:[%s3587_s4 + $0x58] sm:$0xff] }
  0xd4   : > { %697 = vmatprep.mubr.f32.mxu0 %v2838_v2  ;;  %1030 = vmatprep.mubr.f32.mxu1 %v2838_v2 }
  0xd7   : > { %2134 = vmatmul.mubr.msk.f32.gmra.mrb[28].mxu0 %vm500_vm3, %v2118_v1  ;;  %2159 = vmatmul.mubr.msk.f32.gmra.mrb[26].mxu1 %vm877_vm5, %v860_v9  ;;  %v2633_v1 = vpack.c.bf16 %v1301_v0, %v1300_v63 }
  0xd8   : > { %703 = vmatprep.mubr.f32.mxu0 %v2838_v2  ;;  %1036 = vmatprep.mubr.f32.mxu1 %v2838_v2 }
  0xdb   : > { %2135 = vmatmul.mubr.msk.f32.gmra.mrb[30].mxu0 %vm500_vm3, %v2119_v3  ;;  %2160 = vmatmul.mubr.msk.f32.gmra.mrb[28].mxu1 %vm877_vm5, %v861_v10  ;;  %v1328_v3 = vld [vmem:[%s3587_s4 + $0x130] sm:$0xff]  ;;  %vm1666_vm3 = vcmask 523264  }
  0xdc   : > { %1042 = vmatprep.mubr.f32.mxu1 %v2838_v2  ;;  %2444 = vmatprep.mubr.msk.f32.mxu0 %vm877_vm5, %v855_v4  ;;  %v1329_v4 = vld [vmem:[%s3587_s4 + $0x138] sm:$0xff] }
  0xdf   : > { %2161 = vmatmul.mubr.msk.f32.gmra.mrb[30].mxu1 %vm877_vm5, %v862_v11  ;;  %2445 = vmatmul.mubr.msk.f32.vlgmr.msra.gmra.mrb[32].mxu0 %vm877_vm5, %v856_v5  ;;  %v2655_v5 = vpack.c.bf16 %v1329_v4, %v1328_v3 }
  0xe0   : > { %1048 = vmatprep.mubr.f32.mxu1 %v2838_v2  ;;  %2447 = vmatprep.mubr.msk.f32.mxu0 %vm877_vm5, %v857_v6  ;;  %v1318_v6 = vld [vmem:[%s3587_s4 + $0xe0] sm:$0xff] }
  0xe1   : > { %2614 = vmatpush3.bf16.msra.mxu0 %v2613_v28  ;;  %2656 = vmatprep.subr.bf16.mxu1 %v2655_v5  ;;  %v1337_v28 = vld [vmem:[%s3587_s4 + $0x178] sm:$0xff] }
  0xe2   : > { %2616 = vmatprep.subr.bf16.mxu0 %v2615_v32  ;;  %2658 = vmatpush3.bf16.msra.mxu1 %v2655_v5  ;;  %v2671_v29 = vpack.c.bf16 %v1337_v28, %v1336_v27 }
  0xe3   : > { %2162 = vmatmul.mubr.msk.f32.gmra.mrb[32].mxu1 %vm877_vm5, %v863_v12  ;;  %2448 = vmatmul.mubr.msk.f32.gmra.mrb[34].mxu0 %vm877_vm5, %v858_v7  ;;  %v1319_v7 = vld [vmem:[%s3587_s4 + $0xe8] sm:$0xff] }
  0xe4   : > { %1054 = vmatprep.mubr.f32.mxu1 %v2838_v2  ;;  %2450 = vmatprep.mubr.msk.f32.mxu0 %vm877_vm5, %v859_v8  ;;  %v2635_v8 = vpack.c.bf16 %v1319_v7, %v1318_v6 }
  0xe5   : > { %2618 = vmatpush3.bf16.msra.mxu0 %v2617_v35 }
  0xe6   : > { %2620 = vmatprep.subr.bf16.mxu0 %v2619_v41 }
  0xe7   : > { %2163 = vmatmul.mubr.msk.f32.gmra.mrb[34].mxu1 %vm877_vm5, %v864_v13  ;;  %2451 = vmatmul.mubr.msk.f32.gmra.mrb[36].mxu0 %vm877_vm5, %v860_v9  ;;  %v1302_v9 = vld [vmem:[%s3587_s4 + $0x60] sm:$0xff] }
  0xe8   : > { %1060 = vmatprep.mubr.f32.mxu1 %v2838_v2  ;;  %2453 = vmatprep.mubr.msk.f32.mxu0 %vm877_vm5, %v861_v10  ;;  %v1303_v10 = vld [vmem:[%s3587_s4 + $0x68] sm:$0xff] }
  0xe9   : > { %2622 = vmatpush3.bf16.msra.mxu0 %v2621_v44 }
  0xea   : > { %2624 = vmatprep.subr.bf16.mxu0 %v2623_v47 }
  0xeb   : > { %2164 = vmatmul.mubr.msk.f32.gmra.mrb[36].mxu1 %vm877_vm5, %v865_v14  ;;  %2454 = vmatmul.mubr.msk.f32.gmra.mrb[38].mxu0 %vm877_vm5, %v862_v11  ;;  %v2637_v11 = vpack.c.bf16 %v1303_v10, %v1302_v9 }
  0xec   : > { %1066 = vmatprep.mubr.f32.mxu1 %v2838_v2  ;;  %2456 = vmatprep.mubr.msk.f32.mxu0 %vm877_vm5, %v863_v12  ;;  %v1320_v12 = vld [vmem:[%s3587_s4 + $0xf0] sm:$0xff] }
  0xed   : > { %2626 = vmatpush3.bf16.msra.mxu0 %v2625_v50 }
  0xee   : > { %2628 = vmatprep.subr.bf16.mxu0 %v2627_v56 }
  0xef   : > { %2165 = vmatmul.mubr.msk.f32.gmra.mrb[38].mxu1 %vm877_vm5, %v866_v15  ;;  %2457 = vmatmul.mubr.msk.f32.gmra.mrb[40].mxu0 %vm877_vm5, %v864_v13  ;;  %v1321_v13 = vld [vmem:[%s3587_s4 + $0xf8] sm:$0xff] }
  0xf0   : > { %1072 = vmatprep.mubr.f32.mxu1 %v2838_v2  ;;  %2459 = vmatprep.mubr.msk.f32.mxu0 %vm877_vm5, %v865_v14  ;;  %v2639_v14 = vpack.c.bf16 %v1321_v13, %v1320_v12 }
  0xf1   : > { %2630 = vmatpush3.bf16.msra.mxu0 %v2629_v59 }
  0xf2   : > { %2632 = vmatprep.subr.bf16.mxu0 %v2631_v62 }
  0xf3   : > { %2166 = vmatmul.mubr.msk.f32.gmra.mrb[40].mxu1 %vm877_vm5, %v867_v16  ;;  %2460 = vmatmul.mubr.msk.f32.gmra.mrb[42].mxu0 %vm877_vm5, %v866_v15  ;;  %v1304_v15 = vld [vmem:[%s3587_s4 + $0x70] sm:$0xff] }
  0xf4   : > { %1078 = vmatprep.mubr.f32.mxu1 %v2838_v2  ;;  %2462 = vmatprep.mubr.msk.f32.mxu0 %vm877_vm5, %v867_v16  ;;  %v1305_v16 = vld [vmem:[%s3587_s4 + $0x78] sm:$0xff] }
  0xf5   : > { %2634 = vmatpush3.bf16.msra.mxu0 %v2633_v1 }
  0xf6   : > { %2636 = vmatprep.subr.bf16.mxu0 %v2635_v8 }
  0xf7   : > { %2167 = vmatmul.mubr.msk.f32.gmra.mrb[42].mxu1 %vm877_vm5, %v868_v17  ;;  %2463 = vmatmul.mubr.msk.f32.gmra.mrb[44].mxu0 %vm877_vm5, %v868_v17  ;;  %v2641_v17 = vpack.c.bf16 %v1305_v16, %v1304_v15 }
  0xf8   : > { %1084 = vmatprep.mubr.f32.mxu1 %v2838_v2  ;;  %2465 = vmatprep.mubr.msk.f32.mxu0 %vm877_vm5, %v869_v18 }
  0xf9   : > { %2638 = vmatpush3.bf16.msra.mxu0 %v2637_v11 }
  0xfa   : > { %2640 = vmatprep.subr.bf16.mxu0 %v2639_v14 }
  0xfb   : > { %2168 = vmatmul.mubr.msk.f32.gmra.mrb[44].mxu1 %vm877_vm5, %v869_v18  ;;  %2466 = vmatmul.mubr.msk.f32.gmra.mrb[46].mxu0 %vm877_vm5, %v870_v21  ;;  %v1330_v18 = vld [vmem:[%s3587_s4 + $0x140] sm:$0xff] }
  0xfc   : > { %1090 = vmatprep.mubr.f32.mxu1 %v2838_v2  ;;  %v2659_v20 = vpack.c.bf16 %v1331_v19, %v1330_v18 }
  0xfd   : > { %2642 = vmatpush3.bf16.msra.mxu0 %v2641_v17 }
  0xfe   : > { %2660 = vmatprep.subr.bf16.mxu1 %v2659_v20 }
  0xff   : > { %2169 = vmatmul.mubr.msk.f32.gmra.mrb[46].mxu1 %vm877_vm5, %v870_v21  ;;  %v1332_v21 = vld [vmem:[%s3587_s4 + $0x150] sm:$0xff] }
 0x100   : > { %2662 = vmatpush3.bf16.msra.mxu1 %v2659_v20  ;;  %v2663_v23 = vpack.c.bf16 %v1333_v22, %v1332_v21 }
 0x102   : > { %2664 = vmatprep.subr.bf16.mxu1 %v2663_v23 }
 0x104   : > { %2666 = vmatpush3.bf16.msra.mxu1 %v2663_v23 }
 0x105   : > { %2668 = vmatprep.subr.bf16.mxu1 %v2667_v26 }
 0x108   : > { %2670 = vmatpush3.bf16.msra.mxu1 %v2667_v26 }
 0x109   : > { %2672 = vmatprep.subr.bf16.mxu1 %v2671_v29 }
 0x10c   : > { %2674 = vmatpush3.bf16.msra.mxu1 %v2671_v29 }
 0x172   : > { %v615_v31 = vpop.f32.mrb[0].mxu0 }
 0x173   : > { %v617_v32 = vpop.f32.mrb[1].mxu0 }
 0x176   : > { %v621_v33 = vpop.f32.mrb[2].mxu0  ;;  %v3313_v34 = vpop.f32.mrb[0].mxu1 }
 0x177   : > { %v623_v35 = vpop.f32.mrb[3].mxu0  ;;  %v3315_v36 = vpop.f32.mrb[1].mxu1 }
 0x17a   : > { %v627_v37 = vpop.f32.mrb[4].mxu0  ;;  %v3317_v38 = vpop.f32.mrb[2].mxu1 }
 0x17b   : > { %v629_v39 = vpop.f32.mrb[5].mxu0  ;;  %v3319_v40 = vpop.f32.mrb[3].mxu1 }
 0x17e   : > { %v633_v41 = vpop.f32.mrb[6].mxu0  ;;  %v3321_v42 = vpop.f32.mrb[4].mxu1 }
 0x17f   : > { %v635_v43 = vpop.f32.mrb[7].mxu0  ;;  %v3323_v44 = vpop.f32.mrb[5].mxu1 }
 0x182   : > { %v639_v45 = vpop.f32.mrb[8].mxu0  ;;  %v3325_v46 = vpop.f32.mrb[6].mxu1 }
 0x183   : > { %v641_v47 = vpop.f32.mrb[9].mxu0  ;;  %v3327_v48 = vpop.f32.mrb[7].mxu1 }
 0x186   : > { %v645_v49 = vpop.f32.mrb[10].mxu0  ;;  %v3329_v50 = vpop.f32.mrb[8].mxu1 }
 0x187   : > { %v647_v51 = vpop.f32.mrb[11].mxu0  ;;  %v3331_v52 = vpop.f32.mrb[9].mxu1 }
 0x18a   : > { %v651_v53 = vpop.f32.mrb[12].mxu0  ;;  %v3333_v54 = vpop.f32.mrb[10].mxu1 }
 0x18b   : > { %v3335_v55 = vpop.f32.mrb[13].mxu0  ;;  %v3337_v56 = vpop.f32.mrb[11].mxu1 }
 0x18e   : > { %v3339_v57 = vpop.f32.mrb[14].mxu0  ;;  %v3341_v58 = vpop.f32.mrb[12].mxu1 }
 0x18f   : > { %v3343_v59 = vpop.f32.mrb[15].mxu0  ;;  %v3345_v60 = vpop.f32.mrb[13].mxu1 }
 0x192   : > { %v3347_v61 = vpop.f32.mrb[16].mxu0  ;;  %v3349_v62 = vpop.f32.mrb[14].mxu1 }
 0x193   : > { %v3351_v63 = vpop.f32.mrb[17].mxu0  ;;  %v3353_v0 = vpop.f32.mrb[15].mxu1 }
 0x196   : > { %v3355_v1 = vpop.f32.mrb[18].mxu0  ;;  %v1002_v3 = vpop.f32.mrb[16].mxu1 }
 0x197   : > { %v1242_v4 = vmul.f32 %v1002_v3, %v615_v31  ;;  %v3357_v5 = vpop.f32.mrb[19].mxu0  ;;  %v1004_v6 = vpop.f32.mrb[17].mxu1 }
 0x198   : > { %v1243_v7 = vmul.f32 %v1004_v6, %v617_v32 }
 0x19a   : > { %v3359_v8 = vpop.f32.mrb[20].mxu0  ;;  %v1008_v9 = vpop.f32.mrb[18].mxu1  ;;  %1409 = vmatprep.mubr.f32.mxu0 %v1243_v7 }
 0x19b   : > { %v1245_v10 = vmul.f32 %v1008_v9, %v621_v33  ;;  %v3361_v11 = vpop.f32.mrb[21].mxu0  ;;  %v1010_v12 = vpop.f32.mrb[19].mxu1  ;;  %1410 = vmatmul.mubr.f32.vlgmr.msra.gmra.mrb[48].mxu0 %v1242_v4 }
 0x19c   : > { %v1246_v13 = vmul.f32 %v1010_v12, %v623_v35 }
 0x19e   : > { %v3363_v14 = vpop.f32.mrb[22].mxu0  ;;  %v1014_v15 = vpop.f32.mrb[20].mxu1  ;;  %1414 = vmatprep.mubr.f32.mxu0 %v1246_v13 }
 0x19f   : > { %v1248_v16 = vmul.f32 %v1014_v15, %v627_v37  ;;  %v3365_v17 = vpop.f32.mrb[23].mxu0  ;;  %v1016_v18 = vpop.f32.mrb[21].mxu1  ;;  %1415 = vmatmul.mubr.f32.gmra.mrb[50].mxu0 %v1245_v10 }
 0x1a0   : > { %v1249_v19 = vmul.f32 %v1016_v18, %v629_v39 }
 0x1a2   : > { %v3367_v20 = vpop.f32.mrb[24].mxu0  ;;  %v1020_v21 = vpop.f32.mrb[22].mxu1  ;;  %1419 = vmatprep.mubr.f32.mxu0 %v1249_v19 }
 0x1a3   : > { %v1251_v22 = vmul.f32 %v1020_v21, %v633_v41  ;;  %v3369_v23 = vpop.f32.mrb[25].mxu0  ;;  %v1022_v24 = vpop.f32.mrb[23].mxu1  ;;  %1420 = vmatmul.mubr.f32.gmra.mrb[52].mxu0 %v1248_v16 }
 0x1a4   : > { %v1252_v25 = vmul.f32 %v1022_v24, %v635_v43 }
 0x1a6   : > { %v3371_v26 = vpop.f32.mrb[26].mxu0  ;;  %v1026_v27 = vpop.f32.mrb[24].mxu1  ;;  %1424 = vmatprep.mubr.f32.mxu0 %v1252_v25 }
 0x1a7   : > { %v1254_v28 = vmul.f32 %v1026_v27, %v639_v45  ;;  %v3373_v29 = vpop.f32.mrb[27].mxu0  ;;  %v1028_v31 = vpop.f32.mrb[25].mxu1  ;;  %1425 = vmatmul.mubr.f32.gmra.mrb[54].mxu0 %v1251_v22 }
 0x1a8   : > { %v1255_v32 = vmul.f32 %v1028_v31, %v641_v47 }
 0x1aa   : > { %v3375_v33 = vpop.f32.mrb[28].mxu0  ;;  %v1032_v35 = vpop.f32.mrb[26].mxu1  ;;  %1429 = vmatprep.mubr.f32.mxu0 %v1255_v32 }
 0x1ab   : > { %v1257_v37 = vmul.f32 %v1032_v35, %v645_v49  ;;  %v3377_v39 = vpop.f32.mrb[29].mxu0  ;;  %v1034_v41 = vpop.f32.mrb[27].mxu1  ;;  %1430 = vmatmul.mubr.f32.gmra.mrb[56].mxu0 %v1254_v28 }
 0x1ac   : > { %v1258_v43 = vmul.f32 %v1034_v41, %v647_v51 }
 0x1ae   : > { %v3379_v3 = vpop.f32.mrb[30].mxu0  ;;  %v1038_v4 = vpop.f32.mrb[28].mxu1  ;;  %1434 = vmatprep.mubr.f32.mxu0 %v1258_v43 }
 0x1af   : > { %v1260_v45 = vmul.f32 %v1038_v4, %v651_v53  ;;  %v3381_v6 = vpop.f32.mrb[31].mxu0  ;;  %v1040_v7 = vpop.f32.mrb[29].mxu1  ;;  %1435 = vmatmul.mubr.f32.gmra.mrb[58].mxu0 %v1257_v37 }
 0x1b0   : > { %v1261_v47 = vmul.f32 %v1040_v7, %v3335_v55 }
 0x1b2   : > { %v1044_v9 = vpop.f32.mrb[30].mxu1  ;;  %v2446_v10 = vpop.f32.mrb[32].mxu0  ;;  %1439 = vmatprep.mubr.f32.mxu0 %v1261_v47 }
 0x1b3   : > { %v1263_v49 = vmul.f32 %v1044_v9, %v3339_v57  ;;  %v1247_v12 = vmul.f32 %v2446_v10, %v3313_v34  ;;  %v1046_v13 = vpop.f32.mrb[31].mxu1  ;;  %v1163_v51 = vpop.f32.mrb[33].mxu0  ;;  %1440 = vmatmul.mubr.f32.gmra.mrb[60].mxu0 %v1260_v45 }
 0x1b4   : > { %v1264_v15 = vmul.f32 %v1046_v13, %v3343_v59  ;;  %v1244_v53 = vmul.f32 %v1163_v51, %v3315_v36 }
 0x1b6   : > { %v1050_v16 = vpop.f32.mrb[32].mxu1  ;;  %v2449_v18 = vpop.f32.mrb[34].mxu0  ;;  %1444 = vmatprep.mubr.f32.mxu0 %v1264_v15  ;;  %2500 = vmatprep.mubr.f32.mxu1 %v1244_v53 }
 0x1b7   : > { %v1266_v55 = vmul.f32 %v1050_v16, %v3347_v61  ;;  %v1253_v19 = vmul.f32 %v2449_v18, %v3317_v38  ;;  %v1052_v21 = vpop.f32.mrb[33].mxu1  ;;  %v1173_v22 = vpop.f32.mrb[35].mxu0  ;;  %1445 = vmatmul.mubr.f32.gmra.mrb[62].mxu0 %v1263_v49  ;;  %2501 = vmatmul.mubr.f32.vlgmr.msra.gmra.mrb[48].mxu1 %v1247_v12 }
 0x1b8   : > { %v1267_v34 = vmul.f32 %v1052_v21, %v3351_v63  ;;  %v1250_v57 = vmul.f32 %v1173_v22, %v3319_v40  ;;  %v1655_v21 = vld [vmem:[%s3589_s6 + $0x20] sm:$0xff]  ;;  %v1656_v22 = vld [vmem:[%s3589_s6 + $0x28] sm:$0xff] }
 0x1ba   : > { %v1056_v24 = vpop.f32.mrb[34].mxu1  ;;  %v2452_v59 = vpop.f32.mrb[36].mxu0  ;;  %1449 = vmatprep.mubr.f32.mxu0 %v1267_v34  ;;  %2503 = vmatprep.mubr.f32.mxu1 %v1250_v57  ;;  %v2683_v34 = vpack.c.bf16 %v1656_v22, %v1655_v21  ;;  %v1657_v57 = vld [vmem:[%s3589_s6 + $0x30] sm:$0xff] }
 0x1bb   : > { %v1269_v36 = vmul.f32 %v1056_v24, %v3355_v1  ;;  %v1259_v25 = vmul.f32 %v2452_v59, %v3321_v42  ;;  %v1058_v27 = vpop.f32.mrb[35].mxu1  ;;  %v1183_v61 = vpop.f32.mrb[37].mxu0  ;;  %1450 = vmatmul.mubr.f32.gmra.mrb[64].mxu0 %v1266_v55  ;;  %2504 = vmatmul.mubr.f32.gmra.mrb[50].mxu1 %v1253_v19  ;;  %v1658_v24 = vld [vmem:[%s3589_s6 + $0x38] sm:$0xff] }
 0x1bc   : > { %v1270_v38 = vmul.f32 %v1058_v27, %v3357_v5  ;;  %v1256_v28 = vmul.f32 %v1183_v61, %v3323_v44  ;;  %v2687_v59 = vpack.c.bf16 %v1658_v24, %v1657_v57 }
 0x1be   : > { %v1062_v31 = vpop.f32.mrb[36].mxu1  ;;  %v2455_v63 = vpop.f32.mrb[38].mxu0  ;;  %1454 = vmatprep.mubr.f32.mxu0 %v1270_v38  ;;  %2506 = vmatprep.mubr.f32.mxu1 %v1256_v28 }
 0x1bf   : > { %v1272_v40 = vmul.f32 %v1062_v31, %v3359_v8  ;;  %v1265_v32 = vmul.f32 %v2455_v63, %v3325_v46  ;;  %v1064_v35 = vpop.f32.mrb[37].mxu1  ;;  %v1193_v1 = vpop.f32.mrb[39].mxu0  ;;  %1455 = vmatmul.mubr.f32.gmra.mrb[66].mxu0 %v1269_v36  ;;  %2507 = vmatmul.mubr.f32.gmra.mrb[52].mxu1 %v1259_v25 }
 0x1c0   : > { %v1273_v42 = vmul.f32 %v1064_v35, %v3361_v11  ;;  %v1262_v37 = vmul.f32 %v1193_v1, %v3327_v48 }
 0x1c2   : > { %v1068_v41 = vpop.f32.mrb[38].mxu1  ;;  %v2458_v5 = vpop.f32.mrb[40].mxu0  ;;  %1459 = vmatprep.mubr.f32.mxu0 %v1273_v42  ;;  %2509 = vmatprep.mubr.f32.mxu1 %v1262_v37 }
 0x1c3   : > { %v1275_v44 = vmul.f32 %v1068_v41, %v3363_v14  ;;  %v1271_v43 = vmul.f32 %v2458_v5, %v3329_v50  ;;  %v1070_v4 = vpop.f32.mrb[39].mxu1  ;;  %v1203_v8 = vpop.f32.mrb[41].mxu0  ;;  %1460 = vmatmul.mubr.f32.gmra.mrb[68].mxu0 %v1272_v40  ;;  %2510 = vmatmul.mubr.f32.gmra.mrb[54].mxu1 %v1265_v32 }
 0x1c4   : > { %v1276_v46 = vmul.f32 %v1070_v4, %v3365_v17  ;;  %v1268_v45 = vmul.f32 %v1203_v8, %v3331_v52 }
 0x1c6   : > { %v1074_v7 = vpop.f32.mrb[40].mxu1  ;;  %v2461_v11 = vpop.f32.mrb[42].mxu0  ;;  %1464 = vmatprep.mubr.f32.mxu0 %v1276_v46  ;;  %2512 = vmatprep.mubr.f32.mxu1 %v1268_v45  ;;  %v3445_v46 = vld [vmem:[%s3588_s5] ss:$0 sm:$0xff] }
 0x1c7   : > { %v1278_v48 = vmul.f32 %v1074_v7, %v3367_v20  ;;  %v1277_v47 = vmul.f32 %v2461_v11, %v3333_v54  ;;  %v1076_v9 = vpop.f32.mrb[41].mxu1  ;;  %v1213_v14 = vpop.f32.mrb[43].mxu0  ;;  %1465 = vmatmul.mubr.f32.gmra.mrb[70].mxu0 %v1275_v44  ;;  %2513 = vmatmul.mubr.f32.gmra.mrb[56].mxu1 %v1271_v43 }
 0x1c8   : > { %v1279_v50 = vmul.f32 %v1076_v9, %v3369_v23  ;;  %v1274_v10 = vmul.f32 %v1213_v14, %v3337_v56 }
 0x1ca   : > { %v1080_v49 = vpop.f32.mrb[42].mxu1  ;;  %v2464_v17 = vpop.f32.mrb[44].mxu0  ;;  %1469 = vmatprep.mubr.f32.mxu0 %v1279_v50  ;;  %2515 = vmatprep.mubr.f32.mxu1 %v1274_v10 }
 0x1cb   : > { %v1281_v52 = vmul.f32 %v1080_v49, %v3371_v26  ;;  %v1283_v12 = vmul.f32 %v2464_v17, %v3341_v58  ;;  %v1082_v13 = vpop.f32.mrb[43].mxu1  ;;  %v1223_v20 = vpop.f32.mrb[45].mxu0  ;;  %1470 = vmatmul.mubr.f32.gmra.mrb[72].mxu0 %v1278_v48  ;;  %2516 = vmatmul.mubr.f32.gmra.mrb[58].mxu1 %v1277_v47 }
 0x1cc   : > { %v1282_v54 = vmul.f32 %v1082_v13, %v3373_v29  ;;  %v1280_v51 = vmul.f32 %v1223_v20, %v3345_v60 }
 0x1ce   : > { %v1086_v15 = vpop.f32.mrb[44].mxu1  ;;  %v2467_v23 = vpop.f32.mrb[46].mxu0  ;;  %1474 = vmatprep.mubr.f32.mxu0 %v1282_v54  ;;  %2518 = vmatprep.mubr.f32.mxu1 %v1280_v51 }
 0x1cf   : > { %v1284_v56 = vmul.f32 %v1086_v15, %v3375_v33  ;;  %v1289_v53 = vmul.f32 %v2467_v23, %v3349_v62  ;;  %v1088_v16 = vpop.f32.mrb[45].mxu1  ;;  %v1233_v26 = vpop.f32.mrb[47].mxu0  ;;  %1475 = vmatmul.mubr.f32.gmra.mrb[74].mxu0 %v1281_v52  ;;  %2519 = vmatmul.mubr.f32.gmra.mrb[60].mxu1 %v1283_v12  ;;  %v1651_v62 = vld [vmem:[%s3589_s6] sm:$0xff] }
 0x1d0   : > { %v1285_v58 = vmul.f32 %v1088_v16, %v3377_v39  ;;  %v1286_v18 = vmul.f32 %v1233_v26, %v3353_v0  ;;  %v1652_v0 = vld [vmem:[%s3589_s6 + $0x8] sm:$0xff] }
 0x1d1   : > { %v2675_v39 = vpack.c.bf16 %v1652_v0, %v1651_v62 }
 0x1d2   : > { %v1092_v55 = vpop.f32.mrb[46].mxu1  ;;  %1479 = vmatprep.mubr.f32.mxu0 %v1285_v58  ;;  %2521 = vmatprep.mubr.f32.mxu1 %v1286_v18 }
 0x1d3   : > { %v1287_v60 = vmul.f32 %v1092_v55, %v3379_v3  ;;  %v1094_v29 = vpop.f32.mrb[47].mxu1  ;;  %1480 = vmatmul.mubr.f32.gmra.mrb[76].mxu0 %v1284_v56  ;;  %2522 = vmatmul.mubr.f32.gmra.mrb[62].mxu1 %v1289_v53  ;;  %v1653_v3 = vld [vmem:[%s3589_s6 + $0x10] sm:$0xff] }
 0x1d4   : > { %v1288_v33 = vmul.f32 %v1094_v29, %v3381_v6  ;;  %2676 = vmatprep.subr.bf16.mxu1 %v2675_v39  ;;  %v1654_v6 = vld [vmem:[%s3589_s6 + $0x18] sm:$0xff] }
 0x1d5   : > { %2678 = vmatpush3.bf16.msra.mxu1 %v2675_v39  ;;  %v2679_v19 = vpack.c.bf16 %v1654_v6, %v1653_v3 }
 0x1d6   : > { %1484 = vmatprep.mubr.f32.mxu0 %v1288_v33 }
 0x1d7   : > { %1485 = vmatmul.mubr.f32.gmra.mrb[78].mxu0 %v1287_v60  ;;  %2680 = vmatprep.subr.bf16.mxu1 %v2679_v19 }
 0x1d8   : > { %2596 = vmatprep.mubr.msk.f32.mxu0 %vm2841_vm6, %v2838_v2 }
 0x1d9   : > { %2682 = vmatpush3.bf16.msra.mxu1 %v2679_v19 }
 0x1da   : > { %2684 = vmatprep.subr.bf16.mxu1 %v2683_v34 }
 0x1dd   : > { %2686 = vmatpush3.bf16.msra.mxu1 %v2683_v34 }
 0x1de   : > { %2688 = vmatprep.subr.bf16.mxu1 %v2687_v59 }
 0x1e1   : > { %2690 = vmatpush3.bf16.msra.mxu1 %v2687_v59 }
 0x26e   : > { %v2293_v36 = vpop.f32.mrb[48].mxu0 }
 0x26f   : > { %v2294_v25 = vpop.f32.mrb[49].mxu0 }
 0x270   : > { %v2295_v27 = vadd.f32 %v2294_v25, %v2293_v36 }
 0x272   : > { %v2296_v61 = vpop.f32.mrb[50].mxu0  ;;  %v1412_v47 = vadd.f32 %v2295_v27, %v3445_v46 }
 0x273   : > { %v2297_v38 = vpop.f32.mrb[51].mxu0 }
 0x274   : > { %v2298_v28 = vadd.f32 %v2297_v38, %v2296_v61 }
 0x276   : > { %v2299_v31 = vpop.f32.mrb[52].mxu0  ;;  %v1417_v7 = vadd.f32 %v2298_v28, %v3445_v46 }
 0x277   : > { %v2300_v63 = vpop.f32.mrb[53].mxu0 }
 0x278   : > { %v2301_v40 = vadd.f32 %v2300_v63, %v2299_v31 }
 0x27a   : > { %v2302_v32 = vpop.f32.mrb[54].mxu0  ;;  %v1422_v20 = vadd.f32 %v2301_v40, %v3445_v46 }
 0x27b   : > { %v2303_v35 = vpop.f32.mrb[55].mxu0 }
 0x27c   : > { %v2304_v1 = vadd.f32 %v2303_v35, %v2302_v32 }
 0x27e   : > { %v2305_v42 = vpop.f32.mrb[56].mxu0  ;;  %v1427_v17 = vadd.f32 %v2304_v1, %v3445_v46 }
 0x27f   : > { %v2306_v37 = vpop.f32.mrb[57].mxu0 }
 0x280   : > { %v2307_v41 = vadd.f32 %v2306_v37, %v2305_v42 }
 0x282   : > { %v2308_v5 = vpop.f32.mrb[58].mxu0  ;;  %v1432_v55 = vadd.f32 %v2307_v41, %v3445_v46 }
 0x283   : > { %v2309_v44 = vpop.f32.mrb[59].mxu0 }
 0x284   : > { %v2310_v43 = vadd.f32 %v2309_v44, %v2308_v5 }
 0x286   : > { %v2311_v4 = vpop.f32.mrb[60].mxu0  ;;  %v1437_v16 = vadd.f32 %v2310_v43, %v3445_v46 }
 0x287   : > { %v2312_v8 = vpop.f32.mrb[61].mxu0 }
 0x288   : > { %v2313_v45 = vadd.f32 %v2312_v8, %v2311_v4 }
 0x28a   : > { %v2314_v11 = vpop.f32.mrb[62].mxu0  ;;  %v2502_v48 = vpop.f32.mrb[48].mxu1  ;;  %v1442_v22 = vadd.f32 %v2313_v45, %v3445_v46 }
 0x28b   : > { %v1562_v9 = vadd.f32 %v2502_v48, %v1417_v7  ;;  %v2315_v14 = vpop.f32.mrb[63].mxu0  ;;  %v1556_v50 = vpop.f32.mrb[49].mxu1 }
 0x28c   : > { %v2316_v10 = vadd.f32 %v2315_v14, %v2314_v11  ;;  %v1557_v49 = vadd.f32 %v1556_v50, %v1412_v47 }
 0x28d   : > { %v1636_v54 = vmax.f32 %v1562_v9, 0.0 }
 0x28e   : > { %v1635_v52 = vmax.f32 %v1557_v49, 0.0  ;;  %v2317_v12 = vpop.f32.mrb[64].mxu0  ;;  %v2505_v13 = vpop.f32.mrb[50].mxu1  ;;  %v1447_v3 = vadd.f32 %v2316_v10, %v3445_v46 }
 0x28f   : > { %v1572_v51 = vadd.f32 %v2505_v13, %v1427_v17  ;;  %v2318_v15 = vpop.f32.mrb[65].mxu0  ;;  %v1566_v23 = vpop.f32.mrb[51].mxu1 }
 0x290   : > { %v2319_v56 = vadd.f32 %v2318_v15, %v2317_v12  ;;  %v1567_v53 = vadd.f32 %v1566_v23, %v1422_v20  ;;  %2540 = vmatprep.mubr.msk.f32.mxu1 %vm1666_vm3, %v1635_v52 }
 0x291   : > { %2541 = vmatmul.mubr.msk.f32.vlgmr.msra.gmra.mrb[64].mxu1 %vm1666_vm3, %v1636_v54  ;;  %v1638_v60 = vmax.f32 %v1572_v51, 0.0 }
 0x292   : > { %v1637_v26 = vmax.f32 %v1567_v53, 0.0  ;;  %v2320_v58 = vpop.f32.mrb[66].mxu0  ;;  %v2508_v18 = vpop.f32.mrb[52].mxu1  ;;  %v1452_v31 = vadd.f32 %v2319_v56, %v3445_v46 }
 0x293   : > { %v1582_v29 = vadd.f32 %v2508_v18, %v1437_v16  ;;  %v2321_v33 = vpop.f32.mrb[67].mxu0  ;;  %v1576_v62 = vpop.f32.mrb[53].mxu1 }
 0x294   : > { %v2322_v0 = vadd.f32 %v2321_v33, %v2320_v58  ;;  %v1577_v39 = vadd.f32 %v1576_v62, %v1432_v55  ;;  %2543 = vmatprep.mubr.msk.f32.mxu1 %vm1666_vm3, %v1637_v26 }
 0x295   : > { %2544 = vmatmul.mubr.msk.f32.gmra.mrb[66].mxu1 %vm1666_vm3, %v1638_v60  ;;  %v1640_v34 = vmax.f32 %v1582_v29, 0.0 }
 0x296   : > { %v1639_v6 = vmax.f32 %v1577_v39, 0.0  ;;  %v2323_v19 = vpop.f32.mrb[68].mxu0  ;;  %v2511_v21 = vpop.f32.mrb[54].mxu1  ;;  %v1457_v27 = vadd.f32 %v2322_v0, %v3445_v46  ;;  %v2840_v39 = vmov 0.0|0.0  }
 0x297   : > { %v1592_v57 = vadd.f32 %v2511_v21, %v1447_v3  ;;  %v2324_v24 = vpop.f32.mrb[69].mxu0  ;;  %v1586_v59 = vpop.f32.mrb[55].mxu1  ;;  %2691 = vmatprep.subr.bf16.mxu0 %v2840_v39  ;;  %v3484_v3 = vld [vmem:[%s3590_s7] ss:$0 sm:$0xff] }
 0x298   : > { %v2325_v36 = vadd.f32 %v2324_v24, %v2323_v19  ;;  %v1587_v25 = vadd.f32 %v1586_v59, %v1442_v22  ;;  %2546 = vmatprep.mubr.msk.f32.mxu1 %vm1666_vm3, %v1639_v6 }
 0x299   : > { %2547 = vmatmul.mubr.msk.f32.gmra.mrb[68].mxu1 %vm1666_vm3, %v1640_v34  ;;  %v1642_v63 = vmax.f32 %v1592_v57, 0.0 }
 0x29a   : > { %v1641_v61 = vmax.f32 %v1587_v25, 0.0  ;;  %v2326_v38 = vpop.f32.mrb[70].mxu0  ;;  %v2514_v28 = vpop.f32.mrb[56].mxu1  ;;  %v1462_v43 = vadd.f32 %v2325_v36, %v3445_v46 }
 0x29b   : > { %v1602_v40 = vadd.f32 %v2514_v28, %v1457_v27  ;;  %v2327_v32 = vpop.f32.mrb[71].mxu0  ;;  %v1596_v35 = vpop.f32.mrb[57].mxu1 }
 0x29c   : > { %v2328_v1 = vadd.f32 %v2327_v32, %v2326_v38  ;;  %v1597_v42 = vadd.f32 %v1596_v35, %v1452_v31  ;;  %2549 = vmatprep.mubr.msk.f32.mxu1 %vm1666_vm3, %v1641_v61 }
 0x29d   : > { %2550 = vmatmul.mubr.msk.f32.gmra.mrb[70].mxu1 %vm1666_vm3, %v1642_v63  ;;  %v1644_v4 = vmax.f32 %v1602_v40, 0.0 }
 0x29e   : > { %v1643_v37 = vmax.f32 %v1597_v42, 0.0  ;;  %v2329_v41 = vpop.f32.mrb[72].mxu0  ;;  %v1467_v5 = vadd.f32 %v2328_v1, %v3445_v46  ;;  %v2517_v44 = vpop.f32.mrb[58].mxu1 }
 0x29f   : > { %v2330_v8 = vpop.f32.mrb[73].mxu0  ;;  %v1606_v45 = vpop.f32.mrb[59].mxu1 }
 0x2a0   : > { %v1612_v7 = vadd.f32 %v2517_v44, %v1467_v5  ;;  %v2331_v11 = vadd.f32 %v2330_v8, %v2329_v41  ;;  %v1607_v48 = vadd.f32 %v1606_v45, %v1462_v43  ;;  %2552 = vmatprep.mubr.msk.f32.mxu1 %vm1666_vm3, %v1643_v37 }
 0x2a1   : > { %2553 = vmatmul.mubr.msk.f32.gmra.mrb[72].mxu1 %vm1666_vm3, %v1644_v4 }
 0x2a2   : > { %v1646_v47 = vmax.f32 %v1612_v7, 0.0  ;;  %v1645_v9 = vmax.f32 %v1607_v48, 0.0  ;;  %v2332_v14 = vpop.f32.mrb[74].mxu0  ;;  %v2520_v50 = vpop.f32.mrb[60].mxu1  ;;  %v1472_v10 = vadd.f32 %v2331_v11, %v3445_v46 }
 0x2a3   : > { %v2333_v49 = vpop.f32.mrb[75].mxu0  ;;  %v1616_v17 = vpop.f32.mrb[61].mxu1 }
 0x2a4   : > { %v2334_v52 = vadd.f32 %v2333_v49, %v2332_v14  ;;  %v1617_v12 = vadd.f32 %v1616_v17, %v1472_v10  ;;  %2555 = vmatprep.mubr.msk.f32.mxu1 %vm1666_vm3, %v1645_v9 }
 0x2a5   : > { %2556 = vmatmul.mubr.msk.f32.gmra.mrb[74].mxu1 %vm1666_vm3, %v1646_v47 }
 0x2a6   : > { %v1477_v13 = vadd.f32 %v2334_v52, %v3445_v46  ;;  %v1647_v20 = vmax.f32 %v1617_v12, 0.0  ;;  %v2335_v54 = vpop.f32.mrb[76].mxu0  ;;  %v2523_v51 = vpop.f32.mrb[62].mxu1 }
 0x2a7   : > { %v2336_v15 = vpop.f32.mrb[77].mxu0  ;;  %v1626_v23 = vpop.f32.mrb[63].mxu1 }
 0x2a8   : > { %v1622_v56 = vadd.f32 %v2520_v50, %v1477_v13  ;;  %v2337_v53 = vadd.f32 %v2336_v15, %v2335_v54  ;;  %2558 = vmatprep.mubr.msk.f32.mxu1 %vm1666_vm3, %v1647_v20 }
 0x2aa   : > { %v1648_v16 = vmax.f32 %v1622_v56, 0.0  ;;  %v1482_v26 = vadd.f32 %v2337_v53, %v3445_v46  ;;  %v2338_v58 = vpop.f32.mrb[78].mxu0 }
 0x2ab   : > { %v2339_v18 = vpop.f32.mrb[79].mxu0 }
 0x2ac   : > { %v1627_v55 = vadd.f32 %v1626_v23, %v1482_v26  ;;  %v2340_v60 = vadd.f32 %v2339_v18, %v2338_v58  ;;  %2559 = vmatmul.mubr.msk.f32.gmra.mrb[76].mxu1 %vm1666_vm3, %v1648_v16 }
 0x2ae   : > { %v1649_v29 = vmax.f32 %v1627_v55, 0.0  ;;  %v1487_v33 = vadd.f32 %v2340_v60, %v3445_v46 }
 0x2b0   : > { %v1632_v62 = vadd.f32 %v2523_v51, %v1487_v33  ;;  %2561 = vmatprep.mubr.msk.f32.mxu1 %vm1666_vm3, %v1649_v29  ;;  %v1876_v29 = vld [vmem:[%s3591_s8] sm:$0x1]  ;;  %v1884_v33 = vshrl.u32 %v399_v30, 7 }
 0x2b2   : > { %v1650_v0 = vmax.f32 %v1632_v62, 0.0  ;;  %v1885_v62 = vsub.s32 0, %v1884_v33 }
 0x2b4   : > { %2562 = vmatmul.mubr.msk.f32.gmra.mrb[78].mxu1 %vm1666_vm3, %v1650_v0  ;;  %v1881_v0 = vpop.permute.xlu0 %1880 }
 0x364   : > { %v2542_v6 = vpop.f32.mrb[64].mxu1 }
 0x365   : > { %v1787_v46 = vadd.f32 %v2542_v6, %v3484_v3  ;;  %v1781_v19 = vpop.f32.mrb[65].mxu1 }
 0x366   : > { %v1782_v21 = vadd.f32 %v3484_v3, %v1781_v19 }
 0x367   : > { %v1861_v22 = vmax.f32 %v1787_v46, 0.0 }
 0x368   : > { %v1860_v34 = vmax.f32 %v1782_v21, 0.0  ;;  %v2545_v57 = vpop.f32.mrb[66].mxu1 }
 0x369   : > { %v1797_v24 = vadd.f32 %v2545_v57, %v3484_v3  ;;  %v1791_v59 = vpop.f32.mrb[67].mxu1 }
 0x36a   : > { %v2692_v36 = vpack.c.bf16 %v1861_v22, %v1860_v34  ;;  %v1792_v25 = vadd.f32 %v3484_v3, %v1791_v59 }
 0x36b   : > { %v1863_v27 = vmax.f32 %v1797_v24, 0.0 }
 0x36c   : > { %v1862_v61 = vmax.f32 %v1792_v25, 0.0  ;;  %v2548_v38 = vpop.f32.mrb[68].mxu1  ;;  %2694 = vmatpush3.bf16.xpose.msk.msra.mxu0 %vm3491_vm8, %v2692_v36 }
 0x36d   : > { %v1807_v28 = vadd.f32 %v2548_v38, %v3484_v3  ;;  %v1801_v31 = vpop.f32.mrb[69].mxu1  ;;  %2695 = vmatprep.subr.bf16.mxu0 %v2840_v39 }
 0x36e   : > { %v2696_v63 = vpack.c.bf16 %v1863_v27, %v1862_v61  ;;  %v1802_v40 = vadd.f32 %v3484_v3, %v1801_v31 }
 0x36f   : > { %v1865_v32 = vmax.f32 %v1807_v28, 0.0 }
 0x370   : > { %v1864_v35 = vmax.f32 %v1802_v40, 0.0  ;;  %v2551_v1 = vpop.f32.mrb[70].mxu1 }
 0x371   : > { %v1817_v42 = vadd.f32 %v2551_v1, %v3484_v3  ;;  %v1811_v37 = vpop.f32.mrb[71].mxu1 }
 0x372   : > { %v2700_v41 = vpack.c.bf16 %v1865_v32, %v1864_v35  ;;  %v1812_v5 = vadd.f32 %v3484_v3, %v1811_v37 }
 0x373   : > { %v1867_v44 = vmax.f32 %v1817_v42, 0.0 }
 0x374   : > { %v1866_v43 = vmax.f32 %v1812_v5, 0.0  ;;  %v2554_v4 = vpop.f32.mrb[72].mxu1  ;;  %2698 = vmatpush3.bf16.xpose.msk.msra.mxu0 %vm3491_vm8, %v2696_v63 }
 0x375   : > { %v1827_v8 = vadd.f32 %v2554_v4, %v3484_v3  ;;  %v1821_v45 = vpop.f32.mrb[73].mxu1  ;;  %2699 = vmatprep.subr.bf16.mxu0 %v2840_v39 }
 0x376   : > { %v2704_v7 = vpack.c.bf16 %v1867_v44, %v1866_v43  ;;  %v1822_v11 = vadd.f32 %v3484_v3, %v1821_v45 }
 0x377   : > { %v1869_v48 = vmax.f32 %v1827_v8, 0.0 }
 0x378   : > { %v1868_v47 = vmax.f32 %v1822_v11, 0.0  ;;  %v2557_v9 = vpop.f32.mrb[74].mxu1 }
 0x379   : > { %v1837_v14 = vadd.f32 %v2557_v9, %v3484_v3  ;;  %v1831_v50 = vpop.f32.mrb[75].mxu1 }
 0x37a   : > { %v2708_v10 = vpack.c.bf16 %v1869_v48, %v1868_v47  ;;  %v1832_v49 = vadd.f32 %v3484_v3, %v1831_v50 }
 0x37b   : > { %v1871_v17 = vmax.f32 %v1837_v14, 0.0 }
 0x37c   : > { %v1870_v52 = vmax.f32 %v1832_v49, 0.0  ;;  %2702 = vmatpush3.bf16.xpose.msk.msra.mxu0 %vm3491_vm8, %v2700_v41 }
 0x37d   : > { %2703 = vmatprep.subr.bf16.mxu0 %v2840_v39 }
 0x37e   : > { %v2712_v12 = vpack.c.bf16 %v1871_v17, %v1870_v52 }
 0x37f   : > { %v2560_v13 = vpop.f32.mrb[76].mxu1 }
 0x380   : > { %v1847_v20 = vadd.f32 %v2560_v13, %v3484_v3  ;;  %v1841_v54 = vpop.f32.mrb[77].mxu1 }
 0x381   : > { %v1842_v51 = vadd.f32 %v3484_v3, %v1841_v54 }
 0x382   : > { %v1873_v15 = vmax.f32 %v1847_v20, 0.0 }
 0x383   : > { %v1872_v23 = vmax.f32 %v1842_v51, 0.0 }
 0x384   : > { %2706 = vmatpush3.bf16.xpose.msk.msra.mxu0 %vm3491_vm8, %v2704_v7 }
 0x385   : > { %v2716_v56 = vpack.c.bf16 %v1873_v15, %v1872_v23  ;;  %2707 = vmatprep.subr.bf16.mxu0 %v2840_v39 }
 0x387   : > { %v2563_v53 = vpop.f32.mrb[78].mxu1 }
 0x388   : > { %v1857_v16 = vadd.f32 %v2563_v53, %v3484_v3  ;;  %v1851_v26 = vpop.f32.mrb[79].mxu1 }
 0x389   : > { %v1852_v58 = vadd.f32 %v3484_v3, %v1851_v26  ;;  %v1886_v3 = vrot.slane %v1881_v0, %v1885_v62 }
 0x38a   : > { %v1875_v18 = vmax.f32 %v1857_v16, 0.0 }
 0x38b   : > { %v1874_v55 = vmax.f32 %v1852_v58, 0.0 }
 0x38c   : > { %2710 = vmatpush3.bf16.xpose.msk.msra.mxu0 %vm3491_vm8, %v2708_v10 }
 0x38d   : > { %v2720_v60 = vpack.c.bf16 %v1875_v18, %v1874_v55  ;;  %2711 = vmatprep.subr.bf16.mxu0 %v2840_v39 }
 0x394   : > { %2714 = vmatpush3.bf16.xpose.msk.msra.mxu0 %vm3491_vm8, %v2712_v12 }
 0x395   : > { %2715 = vmatprep.subr.bf16.mxu0 %v2840_v39 }
 0x39c   : > { %2718 = vmatpush3.bf16.xpose.msk.msra.mxu0 %vm3491_vm8, %v2716_v56 }
 0x39d   : > { %2719 = vmatprep.subr.bf16.mxu0 %v2840_v39 }
 0x3a4   : > { %2722 = vmatpush3.bf16.xpose.msk.msra.mxu0 %vm3491_vm8, %v2720_v60 }
 0x3ab   : > { %2597 = vmatmul.mubr.msk.f32.vlgmr.msra.gmra.mrb[80].mxu0 %vm1887_vm7, %v1876_v29 }
 0x47e   : > { %v2005_v6 = vpop.f32.mrb[80].mxu0 }
 0x47f   : > { %v2006_v46 = vadd.f32 %v2005_v6, %v1886_v3  ;;  %v2598_v19 = vpop.f32.mrb[81].mxu0 }
 0x481   : > { %v2222_v39 = vmul.f32 -1.442695, %v2006_v46 }
 0x483   : > { %2769 = vpow2.f32 %v2222_v39 }
 0x48d   : > { %v2770_v21 = vpop.eup %2769 }
 0x48e   : > { %v2012_v22 = vadd.f32 1.0, %v2770_v21 }
 0x490   : > { %2771 = vrcp.f32 %v2012_v22 }
 0x49a   : > { %v2772_v30 = vpop.eup %2771 }
 0x49b   : > { %2015 = vst [vmem:[%s370_s27] sm:$0x1] %v2772_v30 }
 0x49c   : > { %2786 = shalt.err (!%p2783_p3)
}
 0x49d   : > { %s2787_s26 = scalar_lea.hbm %s3541_s9, 16  ;;  %s2791_s27 = scalar_lea.hbm %s3593_s10, 48 }
 0x49e   : > { %p2788_p4 = scmp.ne.s32.totalorder %s3541_s9, %s2787_s26  ;;  %p2792_p9 = scmp.lt.u32.totalorder %s3541_s9, %s3593_s10 }
 0x49f   : > { %p2793_p10 = scmp.lt.u32.totalorder %s2791_s27, %s2787_s26  ;;  %p2795_p12 = scmp.lt.u32.totalorder %s2787_s26, %s3541_s9 }
 0x4a0   : > { %p2789_p7 = pnand %p2788_p4, %p2936_p5 }
 0x4a1   : > { %p2794_p11 = por %p2793_p10, %p2792_p9 }
 0x4a2   : > { %p2790_p8 = pneg %p2789_p7 }
 0x4a3   : > { %p2796_p13 = por %p2795_p12, %p2794_p11 }
 0x4a5   : > { %p2797_p0 = pnand %p2796_p13, %p2790_p8 }
 0x4a7   : > { %2800 = shalt.err (!%p2797_p0)
}
 0x4a8   : > { %2723 = dma.vmem_to_hbm [thread:$0]  (%p2936_p5), %s3543_s13, 16, %s3541_s9, %s2017_s19  }
 0x4a9 PF: > { %p2729_p1 = scmp.ge.s32.totalorder %s2835_s18, 2  ;;  %s2041_s11 = sand.u32 1, %s2823_s15  }
 0x4aa   : > { %s2042_s21 = scalar_lea.sflag [#allocation4], %s2041_s11 }
 0x4ab   : > { %p2726_p2 = pnand %p2729_p1, %p2940_p6 }
 0x4ad   : > { %2818 = dma.done.wait (!%p2726_p2), %s2042_s21, 16  }
 0x4ae   : > { %2820 = vsyncadd (!%p2726_p2), %s2042_s21, 4294967280  ;;  %p22_p3 = scmp.ge.s32.totalorder %s2924_s20, 5   ;;  %s3600_s15 = smov %s2827_s16 }
 0x4af   : > { %s3601_s16 = smov %s2831_s17  ;;  %s3602_s17 = smov %s2934_s23 }
 0x4b0   : > { %s3603_s18 = smov %s2924_s20  ;;  %24 = sbr.rel (!%p22_p3) target bundleno = 6 (0x6), region = 98 }
 0x4b7   :  { %2046 = vsyncpa [#allocation4], 1 }
 0x4b8   :  { %2048 = vsyncpa [#allocation4 + $0x1], 1 }

</bundles_post_ra>
